<compile_context>
chip_gen: v6e
topology: v6e:2x2x1
jax: 0.10.0
libtpu: 0.0.40
codegen_flags: <defaults>
</compile_context>

<pallas_src>
import jax
import jax.numpy as jnp
from jax.experimental import pallas as pl
from jax.experimental.pallas import tpu as pltpu


# ------------------------------- fast bounded-range sine ------------------------------- #

_INV_PI = 0.3183098861837907
_PI_HI = 3.140625                   # exactly representable in a few mantissa bits
_PI_LO = 9.67653589793e-04          # pi - _PI_HI


def _fast_sin(x):
    """sin(x) for moderately bounded f32 args (|x| <~ 1e3).

    One Cody-Waite reduction step by pi, parity sign, degree-9 odd polynomial on
    [-pi/2, pi/2].  Max abs error ~4e-6 — far inside the 5e-4 test tolerance.
    ~14 VALU ops vs ~25+ for the generic lowering; all on the VPU (no EUP needed).
    """
    k = jnp.round(x * jnp.float32(_INV_PI))
    # two-step Cody-Waite subtraction keeps t accurate for k up to a few hundred
    t = (x - k * jnp.float32(_PI_HI)) - k * jnp.float32(_PI_LO)
    # parity sign: (-1)^k, computed entirely in f32 (k is an exact small integer)
    parity = k - 2.0 * jnp.floor(k * 0.5)            # 0.0 or 1.0
    sign = 1.0 - 2.0 * parity
    t2 = t * t
    p = jnp.float32(2.7557319224e-06)
    p = p * t2 + jnp.float32(-1.9841269841e-04)
    p = p * t2 + jnp.float32(8.3333333333e-03)
    p = p * t2 + jnp.float32(-1.6666666667e-01)
    return sign * (t + t * t2 * p)


# ------------------------------------ Pallas kernel ------------------------------------ #

def _scale_encoder_kernel(x_ref, w1_ref, b1_ref, w2_ref, b2_ref, feat_ref, rel_ref):
    x = x_ref[...]                          # (2, TN)  f32 coords tile
    w1 = w1_ref[...]                        # (H, 2)   folded: scale*omega_1*W1^T
    # Layer 1: K=2 contraction -> two broadcast FMAs on the VPU (MXU not worth feeding).
    h = w1[:, 0:1] * x[0:1, :] + w1[:, 1:2] * x[1:2, :] + b1_ref[...]
    h = _fast_sin(h)                        # (H, TN)
    # Layer 2: (F, H) @ (H, TN) — tiny MXU matmul, f32 accumulate (MXU has slack; stays
    # f32 to hold the 5e-4 tolerance, see review note on bf16).
    y = jnp.dot(w2_ref[...], h, preferred_element_type=jnp.float32) + b2_ref[...]
    f = _fast_sin(y)                        # (F, TN)
    feat_ref[...] = f.astype(feat_ref.dtype)            # lane-dense store
    # Fused get_relevance: mean(|f|) over the channel (sublane) axis -> (1, TN).
    rel_ref[...] = jnp.mean(jnp.abs(f), axis=0, keepdims=True).astype(rel_ref.dtype)


# -------------------------------------- wrapper ---------------------------------------- #

def _pick_tile(n, tn_req):
    """Multiple-of-128 tile; big enough to amortise pipeline overhead, capped at 32768 so
    v7x's 32 MiB scoped VMEM is never at risk; splits mid-size N in two so both v7x
    TensorCores get work (single-TC v5e/v6e only pay one extra ~0.35us step)."""
    tn_req = max(128, (min(int(tn_req), 32768) // 128) * 128)
    n128 = ((n + 127) // 128) * 128
    if n128 > tn_req:
        return tn_req
    if n128 >= 8192:
        return max(128, (((n128 // 2) + 127) // 128) * 128)   # grid == 2
    return n128                                               # small N: one snug tile


def scale_encoder_forward(coords, w1, b1, w2, b2, *, scale_level, tn=16384,
                          coords_channels_major=False, out_channels_major=False,
                          return_relevance=False):
    """ScaleEncoder forward.

    coords: (N, 2) f32 (PyTorch-facing) or (2, N) if coords_channels_major=True.
    Returns features (N, F) (or (F, N) if out_channels_major), and optionally the fused
    relevance = mean(|features|, channel) as (N, 1) / (1, N).
    """
    if coords_channels_major:
        in_dim, n = coords.shape
        x_t = coords.astype(jnp.float32)
    else:
        n, in_dim = coords.shape
        x_t = coords.astype(jnp.float32).T           # wrapper-side layout plumbing
    hidden = w1.shape[1]
    feature_dim = w2.shape[1]

    scale_factor = float(2 ** scale_level)
    omega_1 = 30.0 / scale_factor
    omega_2 = 30.0

    # Fold scale / omega into the tiny weights once (O(1), outside the kernel).
    w1f = (scale_factor * omega_1) * w1.T             # (hidden, in_dim)
    b1f = (omega_1 * b1).reshape(hidden, 1)           # (hidden, 1)
    w2f = omega_2 * w2.T                              # (feature_dim, hidden)
    b2f = (omega_2 * b2).reshape(feature_dim, 1)      # (feature_dim, 1)

    tn_eff = _pick_tile(n, tn)
    grid = pl.cdiv(n, tn_eff)
    n_pad = grid * tn_eff

    x_t = jnp.pad(x_t, ((0, 0), (0, n_pad - n)))      # ragged tail padded, sliced off below

    # Advisory cost: ~1.2 kflop/point (two sins + tiny matmul), no transcendentals
    # (the custom sine is pure VPU), in/out bytes per point = (2 + F + 1) * 4.
    cost = pl.CostEstimate(
        flops=int(1256 * n_pad),
        transcendentals=0,
        bytes_accessed=int((in_dim + feature_dim + 1) * 4 * n_pad),
    )

    feat_t, rel_t = pl.pallas_call(
        _scale_encoder_kernel,
        out_shape=(
            jax.ShapeDtypeStruct((feature_dim, n_pad), jnp.float32),
            jax.ShapeDtypeStruct((1, n_pad), jnp.float32),
        ),
        grid_spec=pltpu.PrefetchScalarGridSpec(
            num_scalar_prefetch=0,
            grid=(grid,),
            in_specs=[
                pl.BlockSpec((in_dim, tn_eff), lambda i: (0, i)),        # coords tile
                pl.BlockSpec((hidden, in_dim), lambda i: (0, 0)),        # W1 folded (resident)
                pl.BlockSpec((hidden, 1), lambda i: (0, 0)),             # b1 folded
                pl.BlockSpec((feature_dim, hidden), lambda i: (0, 0)),   # W2 folded
                pl.BlockSpec((feature_dim, 1), lambda i: (0, 0)),        # b2 folded
            ],
            out_specs=[
                pl.BlockSpec((feature_dim, tn_eff), lambda i: (0, i)),   # features
                pl.BlockSpec((1, tn_eff), lambda i: (0, i)),             # relevance
            ],
        ),
        compiler_params=pltpu.CompilerParams(
            dimension_semantics=("parallel",)),
        cost_estimate=cost,
    )(x_t, w1f, b1f, w2f, b2f)

    # TODO(synk): callers that can consume channels-major output should set
    # out_channels_major=True to skip this HBM-bound transpose pass entirely.
    if out_channels_major:
        feat = feat_t[:, :n]
        rel = rel_t[:, :n]
    else:
        feat = feat_t[:, :n].T                         # slice-then-transpose (less work)
        rel = rel_t[:, :n].T
    return (feat, rel) if return_relevance else feat


def scale_encoder_get_relevance(coords, w1, b1, w2, b2, *, scale_level, **kw):
    """PyTorch ScaleEncoder.get_relevance equivalent (fused into the same kernel pass)."""
    _, rel = scale_encoder_forward(coords, w1, b1, w2, b2, scale_level=scale_level,
                                   return_relevance=True, **kw)
    return rel


# -------------------------------- init & pure-JAX reference ---------------------------- #

def init_params(key, scale_level, feature_dim=8, hidden=32, in_dim=2):
    """Deterministic SIREN-style init (matches SineLayer.init_weights)."""
    k1, k2, k3, k4 = jax.random.split(key, 4)
    w1 = jax.random.uniform(k1, (in_dim, hidden), jnp.float32,
                            minval=-1.0 / in_dim, maxval=1.0 / in_dim)
    b1 = jax.random.uniform(k2, (1, hidden), jnp.float32,
                            minval=-1.0 / jnp.sqrt(in_dim),
                            maxval=1.0 / jnp.sqrt(in_dim))
    lim = float(jnp.sqrt(6.0 / hidden) / 30.0)
    w2 = jax.random.uniform(k3, (hidden, feature_dim), jnp.float32,
                            minval=-lim, maxval=lim)
    b2 = jax.random.uniform(k4, (1, feature_dim), jnp.float32,
                            minval=-1.0 / jnp.sqrt(hidden),
                            maxval=1.0 / jnp.sqrt(hidden))
    return w1, b1, w2, b2


def reference_forward(coords, w1, b1, w2, b2, *, scale_level):
    """Pure-JAX mirror of the PyTorch ScaleEncoder forward (unfolded weights)."""
    scale_factor = float(2 ** scale_level)
    omega_1 = 30.0 / scale_factor
    omega_2 = 30.0
    x = coords * scale_factor
    h = jnp.sin(omega_1 * (x @ w1 + b1))
    return jnp.sin(omega_2 * (h @ w2 + b2))


# ------------------------------------------ test --------------------------------------- #

if __name__ == "__main__":
    scale_level = 1
    feature_dim = 8
    N = 1000  # ragged on purpose: exercises the pad-and-slice tail path

    key = jax.random.PRNGKey(0)
    kp, kc = jax.random.split(key)
    w1, b1, w2, b2 = init_params(kp, scale_level, feature_dim=feature_dim)
    coords = jax.random.uniform(kc, (N, 2), jnp.float32, minval=-1.0, maxval=1.0)

    feats, rel = scale_encoder_forward(coords, w1, b1, w2, b2,
                                       scale_level=scale_level, return_relevance=True)
    feats = jax.block_until_ready(feats)
    rel = jax.block_until_ready(rel)

    ref = reference_forward(coords, w1, b1, w2, b2, scale_level=scale_level)
    ref_rel = jnp.mean(jnp.abs(ref), axis=-1, keepdims=True)

    assert feats.shape == (N, feature_dim)
    assert rel.shape == (N, 1)
    # folded weights + custom bounded-range sine: both well inside 5e-4 on sin outputs
    assert jnp.max(jnp.abs(feats - ref)) < 5e-4, "feature mismatch vs pure-JAX reference"
    assert jnp.max(jnp.abs(rel - ref_rel)) < 5e-4, "relevance mismatch vs pure-JAX reference"

    print("KERNEL_OK")
</pallas_src>

<mosaic_0001>
module attributes {stable_mosaic.version = 11 : i64} {
  func.func @_scale_encoder_kernel(%arg0: i32, %arg1: memref<2x1024xf32, #tpu.memory_space<vmem>>, %arg2: memref<32x2xf32, #tpu.memory_space<vmem>>, %arg3: memref<32x1xf32, #tpu.memory_space<vmem>>, %arg4: memref<8x32xf32, #tpu.memory_space<vmem>>, %arg5: memref<8x1xf32, #tpu.memory_space<vmem>>, %arg6: memref<8x1024xf32, #tpu.memory_space<vmem>>, %arg7: memref<1x1024xf32, #tpu.memory_space<vmem>>) attributes {dimension_semantics = [#tpu.dimension_semantics<parallel>], iteration_bounds = array<i64: 1>, scalar_prefetch = 0 : i64, scratch_operands = 0 : i64, tpu.core_type = #tpu.core_type<tc>, window_params = [{transform_indices = @transform_0, window_bounds = array<i64: 2, 1024>}, {pipeline_mode = #tpu.pipeline_mode<synchronous>, transform_indices = @transform_1, window_bounds = array<i64: 32, 2>}, {pipeline_mode = #tpu.pipeline_mode<synchronous>, transform_indices = @transform_2, window_bounds = array<i64: 32, 1>}, {pipeline_mode = #tpu.pipeline_mode<synchronous>, transform_indices = @transform_3, window_bounds = array<i64: 8, 32>}, {pipeline_mode = #tpu.pipeline_mode<synchronous>, transform_indices = @transform_4, window_bounds = array<i64: 8, 1>}, {transform_indices = @transform_5, window_bounds = array<i64: 8, 1024>}, {transform_indices = @transform_6, window_bounds = array<i64: 1, 1024>}]} {
    %c0 = arith.constant 0 : index
    %c0_0 = arith.constant 0 : index
    %0 = vector.load %arg1[%c0, %c0_0] : memref<2x1024xf32, #tpu.memory_space<vmem>>, vector<2x1024xf32>
    %c0_1 = arith.constant 0 : index
    %c0_2 = arith.constant 0 : index
    %1 = vector.load %arg2[%c0_1, %c0_2] : memref<32x2xf32, #tpu.memory_space<vmem>>, vector<32x2xf32>
    %2 = vector.extract_strided_slice %1 {offsets = [0, 0], sizes = [32, 1], strides = [1, 1]} : vector<32x2xf32> to vector<32x1xf32>
    %3 = vector.extract_strided_slice %0 {offsets = [0, 0], sizes = [1, 1024], strides = [1, 1]} : vector<2x1024xf32> to vector<1x1024xf32>
    %4 = vector.broadcast %2 : vector<32x1xf32> to vector<32x1024xf32>
    %5 = vector.broadcast %3 : vector<1x1024xf32> to vector<32x1024xf32>
    %6 = arith.mulf %4, %5 : vector<32x1024xf32>
    %7 = vector.extract_strided_slice %1 {offsets = [0, 1], sizes = [32, 1], strides = [1, 1]} : vector<32x2xf32> to vector<32x1xf32>
    %8 = vector.extract_strided_slice %0 {offsets = [1, 0], sizes = [1, 1024], strides = [1, 1]} : vector<2x1024xf32> to vector<1x1024xf32>
    %9 = vector.broadcast %7 : vector<32x1xf32> to vector<32x1024xf32>
    %10 = vector.broadcast %8 : vector<1x1024xf32> to vector<32x1024xf32>
    %11 = arith.mulf %9, %10 : vector<32x1024xf32>
    %12 = arith.addf %6, %11 : vector<32x1024xf32>
    %c0_3 = arith.constant 0 : index
    %c0_4 = arith.constant 0 : index
    %13 = vector.load %arg3[%c0_3, %c0_4] : memref<32x1xf32, #tpu.memory_space<vmem>>, vector<32x1xf32>
    %14 = vector.broadcast %13 : vector<32x1xf32> to vector<32x1024xf32>
    %15 = arith.addf %12, %14 : vector<32x1024xf32>
    %cst = arith.constant 0.318309873 : f32
    %16 = vector.broadcast %cst : f32 to vector<32x1024xf32>
    %17 = arith.mulf %15, %16 : vector<32x1024xf32>
    %18 = math.roundeven %17 : vector<32x1024xf32>
    %cst_5 = arith.constant 3.140625 : f32
    %19 = vector.broadcast %cst_5 : f32 to vector<32x1024xf32>
    %20 = arith.mulf %18, %19 : vector<32x1024xf32>
    %21 = arith.subf %15, %20 : vector<32x1024xf32>
    %cst_6 = arith.constant 9.67653584E-4 : f32
    %22 = vector.broadcast %cst_6 : f32 to vector<32x1024xf32>
    %23 = arith.mulf %18, %22 : vector<32x1024xf32>
    %24 = arith.subf %21, %23 : vector<32x1024xf32>
    %cst_7 = arith.constant 5.000000e-01 : f32
    %25 = vector.broadcast %cst_7 : f32 to vector<32x1024xf32>
    %26 = arith.mulf %18, %25 : vector<32x1024xf32>
    %27 = math.floor %26 : vector<32x1024xf32>
    %cst_8 = arith.constant 2.000000e+00 : f32
    %28 = vector.broadcast %cst_8 : f32 to vector<32x1024xf32>
    %29 = arith.mulf %28, %27 : vector<32x1024xf32>
    %30 = arith.subf %18, %29 : vector<32x1024xf32>
    %cst_9 = arith.constant 2.000000e+00 : f32
    %31 = vector.broadcast %cst_9 : f32 to vector<32x1024xf32>
    %32 = arith.mulf %31, %30 : vector<32x1024xf32>
    %cst_10 = arith.constant 1.000000e+00 : f32
    %33 = vector.broadcast %cst_10 : f32 to vector<32x1024xf32>
    %34 = arith.subf %33, %32 : vector<32x1024xf32>
    %35 = arith.mulf %24, %24 : vector<32x1024xf32>
    %cst_11 = arith.constant 2.75573188E-6 : f32
    %36 = vector.broadcast %cst_11 : f32 to vector<32x1024xf32>
    %37 = arith.mulf %36, %35 : vector<32x1024xf32>
    %cst_12 = arith.constant -1.98412701E-4 : f32
    %38 = vector.broadcast %cst_12 : f32 to vector<32x1024xf32>
    %39 = arith.addf %37, %38 : vector<32x1024xf32>
    %40 = arith.mulf %39, %35 : vector<32x1024xf32>
    %cst_13 = arith.constant 0.00833333377 : f32
    %41 = vector.broadcast %cst_13 : f32 to vector<32x1024xf32>
    %42 = arith.addf %40, %41 : vector<32x1024xf32>
    %43 = arith.mulf %42, %35 : vector<32x1024xf32>
    %cst_14 = arith.constant -0.166666672 : f32
    %44 = vector.broadcast %cst_14 : f32 to vector<32x1024xf32>
    %45 = arith.addf %43, %44 : vector<32x1024xf32>
    %46 = arith.mulf %24, %35 : vector<32x1024xf32>
    %47 = arith.mulf %46, %45 : vector<32x1024xf32>
    %48 = arith.addf %24, %47 : vector<32x1024xf32>
    %49 = arith.mulf %34, %48 : vector<32x1024xf32>
    %c0_15 = arith.constant 0 : index
    %c0_16 = arith.constant 0 : index
    %50 = vector.load %arg4[%c0_15, %c0_16] : memref<8x32xf32, #tpu.memory_space<vmem>>, vector<8x32xf32>
    %cst_17 = arith.constant dense<0.000000e+00> : vector<8x1024xf32>
    %51 = tpu.matmul %50, %49, %cst_17 {dimension_numbers = #tpu.dot_dimension_numbers<[1], [0], [0], [1], [0, 0, 1, 1], [], []>} : vector<8x32xf32>, vector<32x1024xf32>, vector<8x1024xf32> -> vector<8x1024xf32>
    %c0_18 = arith.constant 0 : index
    %c0_19 = arith.constant 0 : index
    %52 = vector.load %arg5[%c0_18, %c0_19] : memref<8x1xf32, #tpu.memory_space<vmem>>, vector<8x1xf32>
    %53 = vector.broadcast %52 : vector<8x1xf32> to vector<8x1024xf32>
    %54 = arith.addf %51, %53 : vector<8x1024xf32>
    %cst_20 = arith.constant 0.318309873 : f32
    %55 = vector.broadcast %cst_20 : f32 to vector<8x1024xf32>
    %56 = arith.mulf %54, %55 : vector<8x1024xf32>
    %57 = math.roundeven %56 : vector<8x1024xf32>
    %cst_21 = arith.constant 3.140625 : f32
    %58 = vector.broadcast %cst_21 : f32 to vector<8x1024xf32>
    %59 = arith.mulf %57, %58 : vector<8x1024xf32>
    %60 = arith.subf %54, %59 : vector<8x1024xf32>
    %cst_22 = arith.constant 9.67653584E-4 : f32
    %61 = vector.broadcast %cst_22 : f32 to vector<8x1024xf32>
    %62 = arith.mulf %57, %61 : vector<8x1024xf32>
    %63 = arith.subf %60, %62 : vector<8x1024xf32>
    %cst_23 = arith.constant 5.000000e-01 : f32
    %64 = vector.broadcast %cst_23 : f32 to vector<8x1024xf32>
    %65 = arith.mulf %57, %64 : vector<8x1024xf32>
    %66 = math.floor %65 : vector<8x1024xf32>
    %cst_24 = arith.constant 2.000000e+00 : f32
    %67 = vector.broadcast %cst_24 : f32 to vector<8x1024xf32>
    %68 = arith.mulf %67, %66 : vector<8x1024xf32>
    %69 = arith.subf %57, %68 : vector<8x1024xf32>
    %cst_25 = arith.constant 2.000000e+00 : f32
    %70 = vector.broadcast %cst_25 : f32 to vector<8x1024xf32>
    %71 = arith.mulf %70, %69 : vector<8x1024xf32>
    %cst_26 = arith.constant 1.000000e+00 : f32
    %72 = vector.broadcast %cst_26 : f32 to vector<8x1024xf32>
    %73 = arith.subf %72, %71 : vector<8x1024xf32>
    %74 = arith.mulf %63, %63 : vector<8x1024xf32>
    %cst_27 = arith.constant 2.75573188E-6 : f32
    %75 = vector.broadcast %cst_27 : f32 to vector<8x1024xf32>
    %76 = arith.mulf %75, %74 : vector<8x1024xf32>
    %cst_28 = arith.constant -1.98412701E-4 : f32
    %77 = vector.broadcast %cst_28 : f32 to vector<8x1024xf32>
    %78 = arith.addf %76, %77 : vector<8x1024xf32>
    %79 = arith.mulf %78, %74 : vector<8x1024xf32>
    %cst_29 = arith.constant 0.00833333377 : f32
    %80 = vector.broadcast %cst_29 : f32 to vector<8x1024xf32>
    %81 = arith.addf %79, %80 : vector<8x1024xf32>
    %82 = arith.mulf %81, %74 : vector<8x1024xf32>
    %cst_30 = arith.constant -0.166666672 : f32
    %83 = vector.broadcast %cst_30 : f32 to vector<8x1024xf32>
    %84 = arith.addf %82, %83 : vector<8x1024xf32>
    %85 = arith.mulf %63, %74 : vector<8x1024xf32>
    %86 = arith.mulf %85, %84 : vector<8x1024xf32>
    %87 = arith.addf %63, %86 : vector<8x1024xf32>
    %88 = arith.mulf %73, %87 : vector<8x1024xf32>
    %c0_31 = arith.constant 0 : index
    %c0_32 = arith.constant 0 : index
    %89 = vector.load %arg6[%c0_31, %c0_32] : memref<8x1024xf32, #tpu.memory_space<vmem>>, vector<8x1024xf32>
    tpu.vector_store %arg6[%c0_31, %c0_32], %88 {strides = array<i32>} : memref<8x1024xf32, #tpu.memory_space<vmem>>, vector<8x1024xf32>,
    %90 = math.absf %88 : vector<8x1024xf32>
    %cst_33 = arith.constant dense<0.000000e+00> : vector<1024xf32>
    %91 = vector.multi_reduction <add>, %90, %cst_33 [0] : vector<8x1024xf32> to vector<1024xf32>
    %92 = vector.shape_cast %91 : vector<1024xf32> to vector<1x1024xf32>
    %cst_34 = arith.constant 8.000000e+00 : f32
    %93 = vector.broadcast %cst_34 : f32 to vector<1x1024xf32>
    %94 = arith.divf %92, %93 : vector<1x1024xf32>
    %c0_35 = arith.constant 0 : index
    %c0_36 = arith.constant 0 : index
    %95 = vector.load %arg7[%c0_35, %c0_36] : memref<1x1024xf32, #tpu.memory_space<vmem>>, vector<1x1024xf32>
    tpu.vector_store %arg7[%c0_35, %c0_36], %94 {strides = array<i32>} : memref<1x1024xf32, #tpu.memory_space<vmem>>, vector<1x1024xf32>,
    return
  }
  func.func @transform_0(%arg0: i32) -> (i32, i32) {
    %c0_i32 = arith.constant 0 : i32
    %c0_i32_0 = arith.constant 0 : i32
    return %c0_i32, %arg0 : i32, i32
  }
  func.func @transform_1(%arg0: i32) -> (i32, i32) {
    %c0_i32 = arith.constant 0 : i32
    %c0_i32_0 = arith.constant 0 : i32
    %c0_i32_1 = arith.constant 0 : i32
    return %c0_i32, %c0_i32_0 : i32, i32
  }
  func.func @transform_2(%arg0: i32) -> (i32, i32) {
    %c0_i32 = arith.constant 0 : i32
    %c0_i32_0 = arith.constant 0 : i32
    %c0_i32_1 = arith.constant 0 : i32
    return %c0_i32, %c0_i32_0 : i32, i32
  }
  func.func @transform_3(%arg0: i32) -> (i32, i32) {
    %c0_i32 = arith.constant 0 : i32
    %c0_i32_0 = arith.constant 0 : i32
    %c0_i32_1 = arith.constant 0 : i32
    return %c0_i32, %c0_i32_0 : i32, i32
  }
  func.func @transform_4(%arg0: i32) -> (i32, i32) {
    %c0_i32 = arith.constant 0 : i32
    %c0_i32_0 = arith.constant 0 : i32
    %c0_i32_1 = arith.constant 0 : i32
    return %c0_i32, %c0_i32_0 : i32, i32
  }
  func.func @transform_5(%arg0: i32) -> (i32, i32) {
    %c0_i32 = arith.constant 0 : i32
    %c0_i32_0 = arith.constant 0 : i32
    return %c0_i32, %arg0 : i32, i32
  }
  func.func @transform_6(%arg0: i32) -> (i32, i32) {
    %c0_i32 = arith.constant 0 : i32
    %c0_i32_0 = arith.constant 0 : i32
    return %c0_i32, %arg0 : i32, i32
  }
}

</mosaic_0001>

<bundles_post_ra>
// kernel: tpu_custom_call.1
= control target key start
LH: loop header
LB: loop body
LE: loop exit
PB: predicated region body
PF: predicated region fallthrough
CT: control target
= control target key end

     0   :  { %12 = vsyncpa [#allocation3], 0  ;;  %v2120_v2 = vmov 1   ;;  %v2121_v3 = vmov 0   ;;  %s2984_s0 = inlined_call_operand.vmem [shape: f32[2,1024], index: 0, kind: input, shape index: {}]   ;;  %s2985_s1 = inlined_call_operand.vmem [shape: f32[32,2], index: 1, kind: input, shape index: {}]   ;;  %s2986_s2 = inlined_call_operand.vmem [shape: f32[32,1], index: 2, kind: input, shape index: {}]   ;;  %s2987_s3 = inlined_call_operand.vmem [shape: f32[8,32], index: 3, kind: input, shape index: {}]   ;;  %s2988_s4 = inlined_call_operand.vmem [shape: f32[8,1], index: 4, kind: input, shape index: {}]   ;;  %s2989_s5 = inlined_call_operand.hbm [shape: f32[8,1024], index: 5, kind: output, shape index: {0}]   ;;  %s2990_s6 = inlined_call_operand.hbm [shape: f32[1,1024], index: 6, kind: output, shape index: {1}]  }
   0x1   :  { %v29_v0 = vld [vmem:[%s2985_s1 + $0x18] sm:$0xff]  ;;  %v28_v1 = vld [vmem:[%s2985_s1 + $0x10] sm:$0xff]  ;;  %2069 = vset.pattern.permute.xlu0 %v2120_v2  ;;  %2070 = vset.pattern.permute.xlu1 %v2121_v3  ;;  %v27_v4 = vld [vmem:[%s2985_s1 + $0x8] sm:$0xff] }
   0x2   :  { %169 = vperm.xlu0 %2069, %v29_v0   ;;  %42 = vperm.xlu1 %2070, %v28_v1  }
   0x3   :  { %13 = vsyncpa [#allocation5], 0  ;;  %v26_v5 = vld [vmem:[%s2985_s1] sm:$0xff]  ;;  %v311_v6 = vld [vmem:[%s2986_s2 + $0x18] sm:$0xff]  ;;  %v52_v11 = vlaneseq }
   0x4   :  { %v309_v7 = vld [vmem:[%s2986_s2 + $0x8] sm:$0xff]  ;;  %v1101_v8 = vld [vmem:[%s2988_s4] sm:$0xff]  ;;  %v310_v9 = vld [vmem:[%s2986_s2 + $0x10] sm:$0xff] }
   0x5   :  { %v308_v10 = vld [vmem:[%s2986_s2] sm:$0xff]  ;;  %v2188_v12 = vshrl.u32 %v52_v11, 7  ;;  %v25_v16 = vld [vmem:[%s2984_s0 + $0x8] sm:$0xff] }
   0x6   :  { %2071 = vset.pattern.permute.xlu1 %v2120_v2  ;;  %161 = vperm.xlu0 %2069, %v27_v4   ;;  %v24_v22 = vld [vmem:[%s2984_s0] sm:$0xff] }
   0x7   :  { %165 = vperm.xlu1 %2071, %v28_v1   ;;  %3007 = vst [vmem:[#allocation8_spill] sm:$0xff] %v2188_v12  ;;  %v182_v13 = vsub.s32 5, %v2188_v12  ;;  %v54_v14 = vsub.s32 0, %v2188_v12  ;;  %v62_v15 = vsub.s32 4, %v2188_v12  ;;  %v174_v17 = vsub.s32 1, %v2188_v12 }
   0x8   :  { %v58_v18 = vsub.s32 2, %v2188_v12  ;;  %v178_v19 = vsub.s32 3, %v2188_v12  ;;  %v66_v20 = vsub.s32 6, %v2188_v12  ;;  %v186_v23 = vsub.s32 7, %v2188_v12 }
   0x9   :  { %v199_v21 = vrot.slane %v25_v16, %v182_v13  ;;  %v71_v24 = vrot.slane %v25_v16, %v54_v14  ;;  %v79_v25 = vrot.slane %v25_v16, %v62_v15  ;;  %v191_v26 = vrot.slane %v25_v16, %v174_v17 }
   0xa   :  { %2073 = vset.pattern.permute.xlu0 %v2121_v3  ;;  %v59_v27 = vrot.slane %v24_v22, %v58_v18  ;;  %v179_v28 = vrot.slane %v24_v22, %v178_v19  ;;  %v67_v29 = vrot.slane %v24_v22, %v66_v20  ;;  %v187_v31 = vrot.slane %v24_v22, %v186_v23 }
   0xb   :  { %2072 = vset.pattern.permute.xlu1 %v2121_v3  ;;  %47 = vperm.xlu0 %2073, %v29_v0   ;;  %v2204_v30 = vrot.slane %v199_v21, %v174_v17  ;;  %v55_v32 = vrot.slane %v24_v22, %v54_v14  ;;  %v175_v33 = vrot.slane %v24_v22, %v174_v17 }
   0xc   :  { %37 = vperm.xlu1 %2072, %v27_v4   ;;  %v63_v34 = vrot.slane %v24_v22, %v62_v15  ;;  %v183_v35 = vrot.slane %v24_v22, %v182_v13  ;;  %v75_v36 = vrot.slane %v25_v16, %v58_v18  ;;  %v195_v37 = vrot.slane %v25_v16, %v178_v19 }
   0xd   :  { %v2208_v39 = vrot.slane %v71_v24, %v54_v14  ;;  %v2210_v40 = vrot.slane %v79_v25, %v54_v14  ;;  %v83_v42 = vrot.slane %v25_v16, %v66_v20  ;;  %v203_v43 = vrot.slane %v25_v16, %v186_v23 }
   0xe   :  { %v2212_v44 = vrot.slane %v191_v26, %v174_v17  ;;  %v2217_v46 = vrot.slane %v59_v27, %v54_v14  ;;  %v2219_v47 = vrot.slane %v179_v28, %v174_v17  ;;  %v2221_v48 = vrot.slane %v67_v29, %v54_v14 }
   0xf   :  { %32 = vperm.xlu0 %2073, %v26_v5   ;;  %v2223_v49 = vrot.slane %v187_v31, %v174_v17  ;;  %v2225_v50 = vrot.slane %v55_v32, %v54_v14  ;;  %v2227_v51 = vrot.slane %v175_v33, %v174_v17  ;;  %v2229_v52 = vrot.slane %v63_v34, %v54_v14 }
  0x10   :  { %329 = vperm.xlu1 %2072, %v311_v6   ;;  %v2231_v53 = vrot.slane %v183_v35, %v174_v17  ;;  %v2233_v54 = vrot.slane %v75_v36, %v54_v14  ;;  %v2235_v55 = vrot.slane %v195_v37, %v174_v17  ;;  %v2247_v59 = vrot.slane %v83_v42, %v54_v14 }
  0x11   :  { %v2249_v60 = vrot.slane %v203_v43, %v174_v17 }
  0x12   :  { %3010 = vst [vmem:[#allocation11_spill] sm:$0xff] %v2235_v55 }
  0x13   :  { %319 = vperm.xlu0 %2073, %v309_v7   ;;  %3014 = vst [vmem:[#allocation15_spill] sm:$0xff] %v2249_v60 }
  0x14   :  { %2074 = vset.pattern.permute.xlu1 %v2120_v2 }
  0x15   :  { %157 = vperm.xlu1 %2074, %v26_v5  }
  0x17   :  { %1104 = vperm.xlu0 %2073, %v1101_v8  }
  0x19   :  { %2075 = vset.pattern.permute.xlu1 %v2121_v3 }
  0x1a   :  { %324 = vperm.xlu1 %2075, %v310_v9  }
  0x1e   :  { %314 = vperm.xlu1 %2075, %v308_v10  }
  0x7d   :  { %v2206_v38 = vpop.permute.xlu1 %42  ;;  %v170_v41 = vpop.permute.xlu0 %169 }
  0x7e   :  { %3008 = vst [vmem:[#allocation9_spill] sm:$0xff] %v2206_v38  ;;  %v2215_v45 = vmul.f32 %v2204_v30, %v170_v41  ;;  %v2239_v56 = vmul.f32 %v2208_v39, %v2206_v38  ;;  %v2243_v57 = vmul.f32 %v2210_v40, %v2206_v38  ;;  %v2252_v61 = vmul.f32 %v2212_v44, %v170_v41 }
  0x7f   :  { %v269_v63 = vmul.f32 %v2219_v47, %v170_v41  ;;  %v271_v0 = vmul.f32 %v2223_v49, %v170_v41  ;;  %v268_v1 = vmul.f32 %v2227_v51, %v170_v41  ;;  %v270_v2 = vmul.f32 %v2231_v53, %v170_v41 }
  0x80   :  { %3009 = vst [vmem:[#allocation10_spill] sm:$0xff] %v2215_v45  ;;  %3011 = vst [vmem:[#allocation12_spill] sm:$0xff] %v2239_v56  ;;  %v141_v3 = vmul.f32 %v2217_v46, %v2206_v38  ;;  %v143_v4 = vmul.f32 %v2221_v48, %v2206_v38  ;;  %v140_v5 = vmul.f32 %v2225_v50, %v2206_v38 }
  0x81   :  { %3012 = vst [vmem:[#allocation13_spill] sm:$0xff] %v2243_v57  ;;  %v2245_v58 = vpop.permute.xlu0 %161  ;;  %v142_v7 = vmul.f32 %v2229_v52, %v2206_v38  ;;  %v2271_v8 = vmul.f32 %v2235_v55, %v170_v41  ;;  %v2274_v9 = vmul.f32 %v2249_v60, %v170_v41 }
  0x82   :  { %3013 = vst [vmem:[#allocation14_spill] sm:$0xff] %v2245_v58  ;;  %v2254_v62 = vpop.permute.xlu1 %165  ;;  %v2278_v10 = vmul.f32 %v2212_v44, %v2245_v58  ;;  %v2282_v11 = vmul.f32 %v2204_v30, %v2245_v58  ;;  %v253_v18 = vmul.f32 %v2219_v47, %v2245_v58  ;;  %v255_v19 = vmul.f32 %v2223_v49, %v2245_v58 }
  0x83   :  { %3015 = vst [vmem:[#allocation16_spill] sm:$0xff] %v2254_v62  ;;  %v261_v6 = vmul.f32 %v2219_v47, %v2254_v62  ;;  %v263_v13 = vmul.f32 %v2223_v49, %v2254_v62  ;;  %v260_v14 = vmul.f32 %v2227_v51, %v2254_v62  ;;  %v2290_v15 = vmul.f32 %v2212_v44, %v2254_v62 }
  0x84   :  { %3016 = vst [vmem:[#allocation17_spill] sm:$0xff] %v2278_v10  ;;  %3017 = vst [vmem:[#allocation18_spill] sm:$0xff] %v2282_v11  ;;  %v262_v17 = vmul.f32 %v2231_v53, %v2254_v62  ;;  %v2302_v20 = vmul.f32 %v2204_v30, %v2254_v62  ;;  %v252_v24 = vmul.f32 %v2227_v51, %v2245_v58 }
  0x85   :  { %3018 = vst [vmem:[#allocation19_spill] sm:$0xff] %v2290_v15  ;;  %v2316_v27 = vadd.f32 %v261_v6, %v141_v3  ;;  %v254_v28 = vmul.f32 %v2231_v53, %v2245_v58  ;;  %v2320_v32 = vadd.f32 %v263_v13, %v143_v4  ;;  %v2322_v33 = vadd.f32 %v260_v14, %v140_v5 }
  0x86   :  { %v2292_v16 = vpop.permute.xlu0 %47  ;;  %3019 = vst [vmem:[#allocation20_spill] sm:$0xff] %v2302_v20  ;;  %v2328_v37 = vadd.f32 %v262_v17, %v142_v7 }
  0x87   :  { %v2304_v21 = vpop.permute.xlu1 %37  ;;  %v149_v22 = vmul.f32 %v2217_v46, %v2292_v16  ;;  %v151_v23 = vmul.f32 %v2221_v48, %v2292_v16  ;;  %v148_v25 = vmul.f32 %v2225_v50, %v2292_v16  ;;  %v150_v26 = vmul.f32 %v2229_v52, %v2292_v16 }
  0x88   :  { %3020 = vst [vmem:[#allocation21_spill] sm:$0xff] %v2304_v21  ;;  %v2326_v34 = vmul.f32 %v2208_v39, %v2292_v16  ;;  %v133_v43 = vmul.f32 %v2217_v46, %v2304_v21  ;;  %v134_v3 = vmul.f32 %v2229_v52, %v2304_v21  ;;  %v2357_v6 = vmul.f32 %v2208_v39, %v2304_v21 }
  0x89   :  { %v301_v29 = vadd.f32 %v269_v63, %v149_v22  ;;  %v303_v31 = vadd.f32 %v271_v0, %v151_v23  ;;  %v300_v35 = vadd.f32 %v268_v1, %v148_v25  ;;  %v302_v36 = vadd.f32 %v270_v2, %v150_v26 }
  0x8a   :  { %v2330_v41 = vpop.permute.xlu0 %32  ;;  %v135_v63 = vmul.f32 %v2221_v48, %v2304_v21  ;;  %v132_v0 = vmul.f32 %v2225_v50, %v2304_v21  ;;  %v2344_v1 = vmul.f32 %v2210_v40, %v2292_v16  ;;  %3022 = vst [vmem:[#allocation23_spill] sm:$0xff] %v2357_v6  ;;  %v2361_v7 = vmul.f32 %v2210_v40, %v2304_v21 }
  0x8b   :  { %v2332_v42 = vpop.permute.xlu1 %329  ;;  %v128_v13 = vmul.f32 %v2208_v39, %v2330_v41  ;;  %v130_v17 = vmul.f32 %v2210_v40, %v2330_v41  ;;  %v285_v26 = vadd.f32 %v253_v18, %v133_v43  ;;  %v2385_v40 = vmul.f32 %v2221_v48, %v2330_v41 }
  0x8c   :  { %3021 = vst [vmem:[#allocation22_spill] sm:$0xff] %v2344_v1  ;;  %v2347_v2 = vadd.f32 %v2332_v42, %v301_v29  ;;  %v2350_v4 = vadd.f32 %v2332_v42, %v303_v31  ;;  %v2353_v5 = vadd.f32 %v2332_v42, %v300_v35  ;;  %3023 = vst [vmem:[#allocation24_spill] sm:$0xff] %v2361_v7 }
  0x8d   :  { %v2366_v14 = vadd.f32 %v2332_v42, %v302_v36  ;;  %v287_v29 = vadd.f32 %v255_v19, %v135_v63  ;;  %v284_v31 = vadd.f32 %v252_v24, %v132_v0  ;;  %v2375_v35 = vadd.f32 %v254_v28, %v134_v3 }
  0x8e   :  { %v389_v22 = vmul.f32 0.31830987, %v2347_v2  ;;  %v391_v23 = vmul.f32 0.31830987, %v2350_v4  ;;  %v2373_v25 = vmul.f32 0.31830987, %v2353_v5  ;;  %v2381_v36 = vmul.f32 %v2217_v46, %v2330_v41  ;;  %v2391_v18 = vpop.permute.xlu0 %319 }
  0x8f   :  { %v2389_v11 = vmul.f32 %v2225_v50, %v2330_v41  ;;  %v2398_v46 = vmul.f32 0.31830987, %v2366_v14  ;;  %v2405_v58 = vadd.f32 %v2391_v18, %v285_v26 }
  0x90   :  { %v2377_v12 = vpop.permute.xlu1 %157  ;;  %v1945_v39 = vcvt.f32.s32 %v389_v22  ;;  %v1961_v28 = vcvt.f32.s32 %v391_v23  ;;  %v1943_v43 = vand.u32 2147483647, %v389_v22  ;;  %v1959_v48 = vand.u32 2147483647, %v391_v23 }
  0x91   :  { %v248_v19 = vmul.f32 %v2212_v44, %v2377_v12  ;;  %v250_v24 = vmul.f32 %v2204_v30, %v2377_v12  ;;  %v1935_v0 = vand.u32 2147483647, %v2373_v25  ;;  %v1937_v10 = vcvt.f32.s32 %v2373_v25 }
  0x92   :  { %v1946_v63 = vcvt.s32.f32 %v1945_v39  ;;  %v1962_v7 = vcvt.s32.f32 %v1961_v28  ;;  %v1948_v44 = vand.u32 2147483648, %v389_v22  ;;  %v2408_v30 = vadd.f32 %v2391_v18, %v287_v29 }
  0x93   :  { %v280_v3 = vadd.f32 %v248_v19, %v128_v13  ;;  %v2401_v50 = vadd.f32 %v250_v24, %v130_v17  ;;  %v1964_v20 = vand.u32 2147483648, %v391_v23  ;;  %v1938_v57 = vcvt.s32.f32 %v1937_v10 }
  0x94   :  { %v1947_v6 = vand.u32 2147483647, %v1946_v63  ;;  %v1963_v39 = vand.u32 2147483647, %v1962_v7  ;;  %v1953_v13 = vcvt.f32.s32 %v2398_v46  ;;  %vm1944_vm0 = vcmp.lt.f32.partialorder %v1943_v43, 8388608.0 }
  0x95   :  { %3024 = vst [vmem:[#allocation25_spill] sm:$0xff] %v2401_v50  ;;  %v2410_v21 = vpop.permute.xlu1 %324  ;;  %v1951_v19 = vand.u32 2147483647, %v2398_v46  ;;  %v2415_v24 = vadd.f32 %v2391_v18, %v284_v31  ;;  %vm1960_vm1 = vcmp.lt.f32.partialorder %v1959_v48, 8388608.0  ;;  %vm2417_vm2 = vcmp.lt.f32.partialorder %v1935_v0, 8388608.0 }
  0x96   :  { %3025 = vst [vmem:[#allocation26_spill] sm:$0xff] %v2410_v21  ;;  %v1949_v17 = vor.u32 %v1948_v44, %v1947_v6  ;;  %v1965_v26 = vor.u32 %v1964_v20, %v1963_v39  ;;  %v1939_v29 = vand.u32 2147483647, %v1938_v57  ;;  %v1940_v7 = vand.u32 2147483648, %v2373_v25 }
  0x97   :  { %v1954_v10 = vcvt.s32.f32 %v1953_v13  ;;  %v2424_v43 = vadd.f32 %v2410_v21, %v2316_v27  ;;  %v1956_v31 = vand.u32 2147483648, %v2398_v46  ;;  %vm2427_vm3 = vcmp.lt.f32.partialorder %v1951_v19, 8388608.0 }
  0x98   :  { %v1950_v63 = vsel %vm1944_vm0, %v1949_v17, %v389_v22  ;;  %v1966_v50 = vsel %vm1960_vm1, %v1965_v26, %v391_v23  ;;  %v2433_v57 = vadd.f32 %v2410_v21, %v2320_v32  ;;  %v2437_v22 = vadd.f32 %v2410_v21, %v2322_v33 }
  0x99   :  { %v453_v6 = vmul.f32 3.140625, %v1950_v63  ;;  %v581_v44 = vmul.f32 0.5, %v1950_v63  ;;  %v517_v48 = vmul.f32 0.0009676536, %v1950_v63  ;;  %v455_v20 = vmul.f32 3.140625, %v1966_v50  ;;  %v2449_v55 = vpop.permute.xlu1 %314 }
  0x9a   :  { %v583_v23 = vmul.f32 0.5, %v1966_v50  ;;  %v1941_v13 = vor.u32 %v1940_v7, %v1939_v29  ;;  %v519_v26 = vmul.f32 0.0009676536, %v1966_v50  ;;  %v1955_v19 = vand.u32 2147483647, %v1954_v10 }
  0x9b   :  { %v485_v27 = vsub.f32 %v2347_v2, %v453_v6  ;;  %v613_v39 = vfloor.f32 %v581_v44  ;;  %v487_v17 = vsub.f32 %v2350_v4, %v455_v20  ;;  %v2442_v15 = vmul.f32 0.31830987, %v2424_v43 }
  0x9c   :  { %v615_v60 = vfloor.f32 %v583_v23  ;;  %v1942_v33 = vsel %vm2417_vm2, %v1941_v13, %v2373_v25  ;;  %v2454_v4 = vmul.f32 0.31830987, %v2433_v57  ;;  %vm1107_vm1 = vcmask 261120  }
  0x9d   :  { %v2444_v56 = vsub.f32 %v485_v27, %v517_v48  ;;  %v645_v32 = vmul.f32 2.0, %v613_v39  ;;  %v2451_v2 = vsub.f32 %v487_v17, %v519_v26  ;;  %v452_v29 = vmul.f32 3.140625, %v1942_v33 }
  0x9e   :  { %v580_v7 = vmul.f32 0.5, %v1942_v33  ;;  %v647_v44 = vmul.f32 2.0, %v615_v60  ;;  %v1957_v48 = vor.u32 %v1956_v31, %v1955_v19  ;;  %v516_v28 = vmul.f32 0.0009676536, %v1942_v33 }
  0x9f   :  { %v677_v10 = vsub.f32 %v1950_v63, %v645_v32  ;;  %v773_v6 = vmul.f32 %v2444_v56, %v2444_v56  ;;  %v775_v20 = vmul.f32 %v2451_v2, %v2451_v2  ;;  %v484_v25 = vsub.f32 %v2353_v5, %v452_v29 }
  0xa0   :  { %v612_v27 = vfloor.f32 %v580_v7  ;;  %v2462_v39 = vadd.f32 %v2449_v55, %v280_v3  ;;  %v679_v13 = vsub.f32 %v1966_v50, %v647_v44  ;;  %v2466_v63 = vadd.f32 %v2410_v21, %v2328_v37 }
  0xa1   :  { %v805_v23 = vmul.f32 2.7557319e-06, %v773_v6  ;;  %v709_v17 = vmul.f32 2.0, %v677_v10  ;;  %v807_v26 = vmul.f32 2.7557319e-06, %v775_v20  ;;  %v2468_v60 = vsub.f32 %v484_v25, %v516_v28 }
  0xa2   :  { %3030 = vst [vmem:[#allocation27_spill] sm:$0xff] %v2462_v39  ;;  %v644_v31 = vmul.f32 2.0, %v612_v27  ;;  %v711_v32 = vmul.f32 2.0, %v679_v13  ;;  %v1958_v5 = vsel %vm2427_vm3, %v1957_v48, %v2398_v46  ;;  %v1879_v3 = vand.u32 2147483647, %v2442_v15 }
  0xa3   :  { %v837_v19 = vadd.f32 -0.0001984127, %v805_v23  ;;  %v839_v29 = vadd.f32 -0.0001984127, %v807_v26  ;;  %v772_v50 = vmul.f32 %v2468_v60, %v2468_v60  ;;  %v454_v37 = vmul.f32 3.140625, %v1958_v5 }
  0xa4   :  { %v676_v7 = vsub.f32 %v1942_v33, %v644_v31  ;;  %v997_v10 = vmul.f32 %v773_v6, %v2444_v56  ;;  %v999_v25 = vmul.f32 %v775_v20, %v2451_v2  ;;  %v582_v28 = vmul.f32 0.5, %v1958_v5 }
  0xa5   :  { %v869_v44 = vmul.f32 %v837_v19, %v773_v6  ;;  %v741_v27 = vsub.f32 1.0, %v709_v17  ;;  %v743_v23 = vsub.f32 1.0, %v711_v32  ;;  %v871_v13 = vmul.f32 %v839_v29, %v775_v20 }
  0xa6   :  { %v804_v39 = vmul.f32 2.7557319e-06, %v772_v50  ;;  %v486_v46 = vsub.f32 %v2366_v14, %v454_v37  ;;  %v518_v48 = vmul.f32 0.0009676536, %v1958_v5  ;;  %v614_v26 = vfloor.f32 %v582_v28 }
  0xa7   :  { %v901_v0 = vadd.f32 0.008333334, %v869_v44  ;;  %v903_v33 = vadd.f32 0.008333334, %v871_v13  ;;  %v708_v31 = vmul.f32 2.0, %v676_v7  ;;  %v1881_v62 = vcvt.f32.s32 %v2442_v15 }
  0xa8   :  { %v836_v21 = vadd.f32 -0.0001984127, %v804_v39  ;;  %v2480_v38 = vsub.f32 %v486_v46, %v518_v48  ;;  %v646_v45 = vmul.f32 2.0, %v614_v26  ;;  %vm2482_vm4 = vcmp.lt.f32.partialorder %v1879_v3, 8388608.0 }
  0xa9   :  { %v933_v19 = vmul.f32 %v901_v0, %v773_v6  ;;  %v935_v17 = vmul.f32 %v903_v33, %v775_v20  ;;  %v1882_v29 = vcvt.s32.f32 %v1881_v62  ;;  %v1884_v14 = vand.u32 2147483648, %v2442_v15 }
  0xaa   :  { %v868_v32 = vmul.f32 %v836_v21, %v772_v50  ;;  %v678_v44 = vsub.f32 %v1958_v5, %v646_v45  ;;  %v774_v39 = vmul.f32 %v2480_v38, %v2480_v38  ;;  %v1897_v7 = vcvt.f32.s32 %v2454_v4 }
  0xab   :  { %v965_v37 = vadd.f32 -0.16666667, %v933_v19  ;;  %v967_v6 = vadd.f32 -0.16666667, %v935_v17  ;;  %v996_v13 = vmul.f32 %v772_v50, %v2468_v60  ;;  %v1883_v3 = vand.u32 2147483647, %v1882_v29 }
  0xac   :  { %v900_v28 = vadd.f32 0.008333334, %v868_v32  ;;  %v740_v46 = vsub.f32 1.0, %v708_v31  ;;  %v806_v48 = vmul.f32 2.7557319e-06, %v774_v39  ;;  %v2494_v45 = vadd.f32 %v2391_v18, %v2375_v35 }
  0xad   :  { %v1029_v0 = vmul.f32 %v997_v10, %v965_v37  ;;  %v1895_v21 = vand.u32 2147483647, %v2454_v4  ;;  %v1031_v62 = vmul.f32 %v999_v25, %v967_v6  ;;  %v1885_v26 = vor.u32 %v1884_v14, %v1883_v3 }
  0xae   :  { %v932_v20 = vmul.f32 %v900_v28, %v772_v50  ;;  %v710_v33 = vmul.f32 2.0, %v678_v44  ;;  %v838_v19 = vadd.f32 -0.0001984127, %v806_v48  ;;  %v1898_v17 = vcvt.s32.f32 %v1897_v7 }
  0xaf   :  { %v1061_v5 = vadd.f32 %v1029_v0, %v2444_v56  ;;  %v1063_v32 = vadd.f32 %v1031_v62, %v2451_v2  ;;  %v998_v10 = vmul.f32 %v774_v39, %v2480_v38  ;;  %v1886_v25 = vsel %vm2482_vm4, %v1885_v26, %v2442_v15 }
  0xb0   :  { %v964_v29 = vadd.f32 -0.16666667, %v932_v20  ;;  %v870_v31 = vmul.f32 %v838_v19, %v774_v39  ;;  %v445_v14 = vmul.f32 3.140625, %v1886_v25  ;;  %v1900_v35 = vand.u32 2147483648, %v2454_v4 }
  0xb1   :  { %v1093_v50 = vmul.f32 %v1061_v5, %v741_v27  ;;  %v1095_v37 = vmul.f32 %v1063_v32, %v743_v23  ;;  %v573_v56 = vmul.f32 0.5, %v1886_v25  ;;  %v1899_v44 = vand.u32 2147483647, %v1898_v17 }
  0xb2   :  { %v1028_v6 = vmul.f32 %v996_v13, %v964_v29  ;;  %v902_v7 = vadd.f32 0.008333334, %v870_v31  ;;  %v477_v2 = vsub.f32 %v2424_v43, %v445_v14  ;;  %v509_v28 = vmul.f32 0.0009676536, %v1886_v25 }
  0xb3   :  { %1135 = vmatprep.subr.mxu0 %v1093_v50  ;;  %v380_v3 = vmul.f32 0.31830987, %v2437_v22  ;;  %1206 = vmatprep.subr.mxu1 %v1095_v37  ;;  %v605_v15 = vfloor.f32 %v573_v56  ;;  %vm1896_vm5 = vcmp.lt.f32.partialorder %v1895_v21, 8388608.0  ;;  %v1901_v27 = vor.u32 %v1900_v35, %v1899_v44 }
  0xb4   :  { %v1060_v1 = vadd.f32 %v1028_v6, %v2468_v60  ;;  %v742_v0 = vsub.f32 1.0, %v710_v33  ;;  %v934_v48 = vmul.f32 %v902_v7, %v774_v39  ;;  %v2506_v62 = vsub.f32 %v477_v2, %v509_v28 }
  0xb5   :  { %v1873_v23 = vcvt.f32.s32 %v380_v3  ;;  %v637_v20 = vmul.f32 2.0, %v605_v15  ;;  %v1902_v26 = vsel %vm1896_vm5, %v1901_v27, %v2454_v4  ;;  %v382_v43 = vmul.f32 0.31830987, %v2466_v63 }
  0xb6   :  { %v1092_v13 = vmul.f32 %v1060_v1, %v740_v46  ;;  %v966_v5 = vadd.f32 -0.16666667, %v934_v48  ;;  %v765_v19 = vmul.f32 %v2506_v62, %v2506_v62  ;;  %v447_v17 = vmul.f32 3.140625, %v1902_v26 }
  0xb7   :  { %v1871_v60 = vand.u32 2147483647, %v380_v3  ;;  %v669_v21 = vsub.f32 %v1886_v25, %v637_v20  ;;  %v575_v32 = vmul.f32 0.5, %v1902_v26  ;;  %v1874_v33 = vcvt.s32.f32 %v1873_v23 }
  0xb8   :  { %1136 = vmatpush1.msra.mxu0 %v1092_v13  ;;  %v1876_v39 = vand.u32 2147483648, %v380_v3  ;;  %v1030_v29 = vmul.f32 %v998_v10, %v966_v5  ;;  %v797_v50 = vmul.f32 2.7557319e-06, %v765_v19  ;;  %v479_v46 = vsub.f32 %v2433_v57, %v447_v17 }
  0xb9   :  { %v511_v31 = vmul.f32 0.0009676536, %v1902_v26  ;;  %v701_v14 = vmul.f32 2.0, %v669_v21  ;;  %v607_v4 = vfloor.f32 %v575_v32  ;;  %v1875_v35 = vand.u32 2147483647, %v1874_v33 }
  0xba   :  { %v1887_v37 = vand.u32 2147483647, %v382_v43  ;;  %v1062_v6 = vadd.f32 %v1030_v29, %v2480_v38  ;;  %v829_v56 = vadd.f32 -0.0001984127, %v797_v50  ;;  %v1889_v7 = vcvt.f32.s32 %v382_v43 }
  0xbb   :  { %v2514_v44 = vsub.f32 %v479_v46, %v511_v31  ;;  %v639_v2 = vmul.f32 2.0, %v607_v4  ;;  %vm1872_vm6 = vcmp.lt.f32.partialorder %v1871_v60, 8388608.0  ;;  %v1877_v25 = vor.u32 %v1876_v39, %v1875_v35 }
  0xbc   :  { %v373_v28 = vmul.f32 0.31830987, %v2405_v58  ;;  %v1094_v10 = vmul.f32 %v1062_v6, %v742_v0  ;;  %v861_v1 = vmul.f32 %v829_v56, %v765_v19  ;;  %v1890_v15 = vcvt.s32.f32 %v1889_v7 }
  0xbd   :  { %v767_v57 = vmul.f32 %v2514_v44, %v2514_v44  ;;  %v733_v27 = vsub.f32 1.0, %v701_v14  ;;  %v989_v48 = vmul.f32 %v765_v19, %v2506_v62  ;;  %v671_v23 = vsub.f32 %v1902_v26, %v639_v2 }
  0xbe   :  { %v1878_v38 = vsel %vm1872_vm6, %v1877_v25, %v380_v3  ;;  %1207 = vmatpush1.msra.mxu1 %v1094_v10  ;;  %v893_v13 = vadd.f32 0.008333334, %v861_v1  ;;  %vm2520_vm7 = vcmp.lt.f32.partialorder %v1887_v37, 8388608.0  ;;  %v1891_v0 = vand.u32 2147483647, %v1890_v15 }
  0xbf   :  { %v799_v20 = vmul.f32 2.7557319e-06, %v767_v57  ;;  %v444_v5 = vmul.f32 3.140625, %v1878_v38  ;;  %v572_v60 = vmul.f32 0.5, %v1878_v38  ;;  %v1892_v21 = vand.u32 2147483648, %v382_v43 }
  0xc0   :  { %v1815_v32 = vand.u32 2147483647, %v373_v28  ;;  %v925_v33 = vmul.f32 %v893_v13, %v765_v19  ;;  %v508_v50 = vmul.f32 0.0009676536, %v1878_v38  ;;  %v703_v46 = vmul.f32 2.0, %v671_v23 }
  0xc1   :  { %v831_v39 = vadd.f32 -0.0001984127, %v799_v20  ;;  %v476_v29 = vsub.f32 %v2437_v22, %v444_v5  ;;  %v604_v26 = vfloor.f32 %v572_v60  ;;  %v1893_v3 = vor.u32 %v1892_v21, %v1891_v0 }
  0xc2   :  { %v1817_v31 = vcvt.f32.s32 %v373_v28  ;;  %v957_v14 = vadd.f32 -0.16666667, %v925_v33  ;;  %v991_v35 = vmul.f32 %v767_v57, %v2514_v44  ;;  %vm2530_vm8 = vcmp.lt.f32.partialorder %v1815_v32, 8388608.0 }
  0xc3   :  { %v863_v4 = vmul.f32 %v831_v39, %v767_v57  ;;  %v2526_v37 = vsub.f32 %v476_v29, %v508_v50  ;;  %v636_v6 = vmul.f32 2.0, %v604_v26  ;;  %v1894_v56 = vsel %vm2520_vm7, %v1893_v3, %v382_v43 }
  0xc4   :  { %v1818_v22 = vcvt.s32.f32 %v1817_v31  ;;  %v1021_v7 = vmul.f32 %v989_v48, %v957_v14  ;;  %v446_v10 = vmul.f32 3.140625, %v1894_v56  ;;  %v735_v1 = vsub.f32 1.0, %v703_v46 }
  0xc5   :  { %v895_v2 = vadd.f32 0.008333334, %v863_v4  ;;  %v764_v25 = vmul.f32 %v2526_v37, %v2526_v37  ;;  %v574_v15 = vmul.f32 0.5, %v1894_v56  ;;  %v1820_v13 = vand.u32 2147483648, %v373_v28 }
  0xc6   :  { %v1819_v23 = vand.u32 2147483647, %v1818_v22  ;;  %v1053_v20 = vadd.f32 %v1021_v7, %v2506_v62  ;;  %v668_v17 = vsub.f32 %v1878_v38, %v636_v6  ;;  %v478_v60 = vsub.f32 %v2466_v63, %v446_v10 }
  0xc7   :  { %v927_v5 = vmul.f32 %v895_v2, %v767_v57  ;;  %v796_v43 = vmul.f32 2.7557319e-06, %v764_v25  ;;  %v510_v0 = vmul.f32 0.0009676536, %v1894_v56  ;;  %v606_v21 = vfloor.f32 %v574_v15 }
  0xc8   :  { %v1821_v32 = vor.u32 %v1820_v13, %v1819_v23  ;;  %v1085_v48 = vmul.f32 %v1053_v20, %v733_v27  ;;  %v375_v29 = vmul.f32 0.31830987, %v2408_v30  ;;  %v988_v50 = vmul.f32 %v764_v25, %v2526_v37 }
  0xc9   :  { %v959_v33 = vadd.f32 -0.16666667, %v927_v5  ;;  %v828_v39 = vadd.f32 -0.0001984127, %v796_v43  ;;  %v2540_v46 = vsub.f32 %v478_v60, %v510_v0  ;;  %v638_v26 = vmul.f32 2.0, %v606_v21 }
  0xca   :  { %v1822_v62 = vsel %vm2530_vm8, %v1821_v32, %v373_v28  ;;  %1137 = vmatprep.subr.mxu0 %v1085_v48  ;;  %v700_v38 = vmul.f32 2.0, %v668_v17  ;;  %v1833_v2 = vcvt.f32.s32 %v375_v29  ;;  %v1836_v43 = vand.u32 2147483648, %v375_v29 }
  0xcb   :  { %v1023_v57 = vmul.f32 %v991_v35, %v959_v33  ;;  %v860_v63 = vmul.f32 %v828_v39, %v764_v25  ;;  %v437_v3 = vmul.f32 3.140625, %v1822_v62  ;;  %v670_v31 = vsub.f32 %v1894_v56, %v638_v26 }
  0xcc   :  { %v766_v27 = vmul.f32 %v2540_v46, %v2540_v46  ;;  %v501_v14 = vmul.f32 0.0009676536, %v1822_v62  ;;  %v565_v4 = vmul.f32 0.5, %v1822_v62  ;;  %v1831_v35 = vand.u32 2147483647, %v375_v29 }
  0xcd   :  { %v1055_v6 = vadd.f32 %v1023_v57, %v2514_v44  ;;  %v892_v22 = vadd.f32 0.008333334, %v860_v63  ;;  %v469_v7 = vsub.f32 %v2405_v58, %v437_v3  ;;  %v2548_v10 = vmul.f32 2.0, %v670_v31 }
  0xce   :  { %v798_v28 = vmul.f32 2.7557319e-06, %v766_v27  ;;  %v597_v19 = vfloor.f32 %v565_v4  ;;  %v1834_v56 = vcvt.s32.f32 %v1833_v2  ;;  %v732_v20 = vsub.f32 1.0, %v700_v38 }
  0xcf   :  { %v1087_v15 = vmul.f32 %v1055_v6, %v735_v1  ;;  %v924_v23 = vmul.f32 %v892_v22, %v764_v25  ;;  %v2550_v13 = vsub.f32 %v469_v7, %v501_v14  ;;  %v372_v0 = vmul.f32 0.31830987, %v2415_v24 }
  0xd0   :  { %v830_v5 = vadd.f32 -0.0001984127, %v798_v28  ;;  %v629_v17 = vmul.f32 2.0, %v597_v19  ;;  %v1835_v60 = vand.u32 2147483647, %v1834_v56  ;;  %v990_v32 = vmul.f32 %v766_v27, %v2540_v46 }
  0xd1   :  { %1208 = vmatprep.subr.mxu1 %v1087_v15  ;;  %v956_v44 = vadd.f32 -0.16666667, %v924_v23  ;;  %v757_v58 = vmul.f32 %v2550_v13, %v2550_v13  ;;  %vm1832_vm9 = vcmp.lt.f32.partialorder %v1831_v35, 8388608.0  ;;  %v734_v48 = vsub.f32 1.0, %v2548_v10 }
  0xd2   :  { %v862_v21 = vmul.f32 %v830_v5, %v766_v27  ;;  %v661_v1 = vsub.f32 %v1822_v62, %v629_v17  ;;  %v1837_v39 = vor.u32 %v1836_v43, %v1835_v60  ;;  %v1809_v57 = vcvt.f32.s32 %v372_v0 }
  0xd3   :  { %v1020_v25 = vmul.f32 %v988_v50, %v956_v44  ;;  %v789_v33 = vmul.f32 2.7557319e-06, %v757_v58  ;;  %v374_v38 = vmul.f32 0.31830987, %v2494_v45  ;;  %v245_v63 = vmul.f32 %v2219_v47, %v2377_v12 }
  0xd4   :  { %v894_v26 = vadd.f32 0.008333334, %v862_v21  ;;  %v693_v31 = vmul.f32 2.0, %v661_v1  ;;  %v1838_v4 = vsel %vm1832_vm9, %v1837_v39, %v375_v29  ;;  %v981_v62 = vmul.f32 %v757_v58, %v2550_v13 }
  0xd5   :  { %v1052_v3 = vadd.f32 %v1020_v25, %v2526_v37  ;;  %v821_v14 = vadd.f32 -0.0001984127, %v789_v33  ;;  %v439_v50 = vmul.f32 3.140625, %v1838_v4  ;;  %v1807_v22 = vand.u32 2147483647, %v372_v0 }
  0xd6   :  { %v926_v6 = vmul.f32 %v894_v26, %v766_v27  ;;  %v567_v10 = vmul.f32 0.5, %v1838_v4  ;;  %v1812_v28 = vand.u32 2147483648, %v372_v0  ;;  %v503_v15 = vmul.f32 0.0009676536, %v1838_v4 }
  0xd7   :  { %v1084_v7 = vmul.f32 %v1052_v3, %v732_v20  ;;  %v853_v2 = vmul.f32 %v821_v14, %v757_v58  ;;  %v471_v35 = vsub.f32 %v2408_v30, %v439_v50  ;;  %v1810_v23 = vcvt.s32.f32 %v1809_v57 }
  0xd8   :  { %v958_v19 = vadd.f32 -0.16666667, %v926_v6  ;;  %v725_v47 = vsub.f32 1.0, %v693_v31  ;;  %v599_v56 = vfloor.f32 %v567_v10  ;;  %v1825_v5 = vcvt.f32.s32 %v374_v38 }
  0xd9   :  { %1138 = vmatpush1.msra.mxu0 %v1084_v7  ;;  %v885_v37 = vadd.f32 0.008333334, %v853_v2  ;;  %v2563_v27 = vsub.f32 %v471_v35, %v503_v15  ;;  %v1811_v17 = vand.u32 2147483647, %v1810_v23  ;;  %v1823_v43 = vand.u32 2147483647, %v374_v38 }
  0xda   :  { %v1022_v29 = vmul.f32 %v990_v32, %v958_v19  ;;  %v631_v20 = vmul.f32 2.0, %v599_v56  ;;  %v1826_v60 = vcvt.s32.f32 %v1825_v5  ;;  %v277_v21 = vadd.f32 %v245_v63, %v2381_v36 }
  0xdb   :  { %v917_v44 = vmul.f32 %v885_v37, %v757_v58  ;;  %v759_v30 = vmul.f32 %v2563_v27, %v2563_v27  ;;  %vm1808_vm10 = vcmp.lt.f32.partialorder %v1807_v22, 8388608.0  ;;  %v1813_v25 = vor.u32 %v1812_v28, %v1811_v17 }
  0xdc   :  { %v1054_v1 = vadd.f32 %v1022_v29, %v2540_v46  ;;  %v1827_v39 = vand.u32 2147483647, %v1826_v60  ;;  %v1828_v26 = vand.u32 2147483648, %v374_v38  ;;  %v2570_v32 = vadd.f32 %v2449_v55, %v277_v21 }
  0xdd   :  { %v949_v33 = vadd.f32 -0.16666667, %v917_v44  ;;  %v663_v3 = vsub.f32 %v1838_v4, %v631_v20  ;;  %v791_v58 = vmul.f32 2.7557319e-06, %v759_v30  ;;  %v1814_v31 = vsel %vm1808_vm10, %v1813_v25, %v372_v0 }
  0xde   :  { %v1086_v57 = vmul.f32 %v1054_v1, %v734_v48  ;;  %v436_v6 = vmul.f32 3.140625, %v1814_v31  ;;  %vm1824_vm11 = vcmp.lt.f32.partialorder %v1823_v43, 8388608.0  ;;  %v247_v36 = vmul.f32 %v2223_v49, %v2377_v12 }
  0xdf   :  { %v1013_v14 = vmul.f32 %v981_v62, %v949_v33  ;;  %v823_v46 = vadd.f32 -0.0001984127, %v791_v58  ;;  %v564_v63 = vmul.f32 0.5, %v1814_v31  ;;  %v1829_v50 = vor.u32 %v1828_v26, %v1827_v39 }
  0xe0   :  { %1209 = vmatpush1.msra.mxu1 %v1086_v57  ;;  %v365_v22 = vmul.f32 0.31830987, %v2570_v32  ;;  %v983_v2 = vmul.f32 %v759_v30, %v2563_v27  ;;  %v468_v48 = vsub.f32 %v2415_v24, %v436_v6  ;;  %v500_v4 = vmul.f32 0.0009676536, %v1814_v31 }
  0xe1   :  { %v1045_v7 = vadd.f32 %v1013_v14, %v2550_v13  ;;  %v695_v0 = vmul.f32 2.0, %v663_v3  ;;  %v855_v62 = vmul.f32 %v823_v46, %v759_v30  ;;  %v596_v10 = vfloor.f32 %v564_v63 }
  0xe2   :  { %v1830_v28 = vsel %vm1824_vm11, %v1829_v50, %v374_v38  ;;  %v2578_v35 = vsub.f32 %v468_v48, %v500_v4  ;;  %v279_v15 = vadd.f32 %v247_v36, %v2385_v40  ;;  %v1751_v5 = vand.u32 2147483647, %v365_v22 }
  0xe3   :  { %v1077_v19 = vmul.f32 %v1045_v7, %v725_v47  ;;  %v438_v49 = vmul.f32 3.140625, %v1830_v28  ;;  %v887_v23 = vadd.f32 0.008333334, %v855_v62  ;;  %v628_v37 = vmul.f32 2.0, %v596_v10 }
  0xe4   :  { %v566_v56 = vmul.f32 0.5, %v1830_v28  ;;  %v756_v13 = vmul.f32 %v2578_v35, %v2578_v35  ;;  %v502_v29 = vmul.f32 0.0009676536, %v1830_v28  ;;  %v1753_v17 = vcvt.f32.s32 %v365_v22 }
  0xe5   :  { %1139 = vmatprep.subr.mxu0 %v1077_v19  ;;  %v470_v24 = vsub.f32 %v2494_v45, %v438_v49  ;;  %v919_v43 = vmul.f32 %v887_v23, %v759_v30  ;;  %v660_v38 = vsub.f32 %v1814_v31, %v628_v37  ;;  %v2585_v44 = vadd.f32 %v2449_v55, %v279_v15 }
  0xe6   :  { %v598_v47 = vfloor.f32 %v566_v56  ;;  %v727_v20 = vsub.f32 1.0, %v695_v0  ;;  %v788_v40 = vmul.f32 2.7557319e-06, %v756_v13  ;;  %v1754_v21 = vcvt.s32.f32 %v1753_v17 }
  0xe7   :  { %v2587_v60 = vsub.f32 %v470_v24, %v502_v29  ;;  %v951_v1 = vadd.f32 -0.16666667, %v919_v43  ;;  %v2589_v25 = vmul.f32 2.0, %v660_v38  ;;  %v367_v39 = vmul.f32 0.31830987, %v2585_v44 }
  0xe8   :  { %v630_v33 = vmul.f32 2.0, %v598_v47  ;;  %v820_v45 = vadd.f32 -0.0001984127, %v788_v40  ;;  %v1755_v26 = vand.u32 2147483647, %v1754_v21  ;;  %v1756_v57 = vand.u32 2147483648, %v365_v22 }
  0xe9   :  { %v758_v30 = vmul.f32 %v2587_v60, %v2587_v60  ;;  %v1015_v3 = vmul.f32 %v983_v2, %v951_v1  ;;  %v980_v58 = vmul.f32 %v756_v13, %v2578_v35  ;;  %vm1752_vm12 = vcmp.lt.f32.partialorder %v1751_v5, 8388608.0 }
  0xea   :  { %v662_v31 = vsub.f32 %v1830_v28, %v630_v33  ;;  %v852_v14 = vmul.f32 %v820_v45, %v756_v13  ;;  %v1757_v36 = vor.u32 %v1756_v57, %v1755_v26  ;;  %v244_v46 = vmul.f32 %v2227_v51, %v2377_v12 }
  0xeb   :  { %v790_v6 = vmul.f32 2.7557319e-06, %v758_v30  ;;  %v1047_v63 = vadd.f32 %v1015_v3, %v2563_v27  ;;  %v724_v50 = vsub.f32 1.0, %v2589_v25  ;;  %v1767_v7 = vand.u32 2147483647, %v367_v39 }
  0xec   :  { %v1769_v48 = vcvt.f32.s32 %v367_v39  ;;  %v884_v4 = vadd.f32 0.008333334, %v852_v14  ;;  %v982_v2 = vmul.f32 %v758_v30, %v2587_v60  ;;  %v1758_v62 = vsel %vm1752_vm12, %v1757_v36, %v365_v22 }
  0xed   :  { %v822_v0 = vadd.f32 -0.0001984127, %v790_v6  ;;  %v1079_v10 = vmul.f32 %v1047_v63, %v727_v20  ;;  %v694_v28 = vmul.f32 2.0, %v662_v31  ;;  %v429_v19 = vmul.f32 3.140625, %v1758_v62 }
  0xee   :  { %v1772_v49 = vand.u32 2147483648, %v367_v39  ;;  %v916_v15 = vmul.f32 %v884_v4, %v756_v13  ;;  %v557_v37 = vmul.f32 0.5, %v1758_v62  ;;  %v1770_v56 = vcvt.s32.f32 %v1769_v48 }
  0xef   :  { %v854_v23 = vmul.f32 %v822_v0, %v758_v30  ;;  %1210 = vmatprep.subr.mxu1 %v1079_v10  ;;  %v461_v51 = vsub.f32 %v2570_v32, %v429_v19  ;;  %v493_v27 = vmul.f32 0.0009676536, %v1758_v62  ;;  %v276_v5 = vadd.f32 %v244_v46, %v2389_v11 }
  0xf0   :  { %v948_v24 = vadd.f32 -0.16666667, %v916_v15  ;;  %v589_v17 = vfloor.f32 %v557_v37  ;;  %v1771_v43 = vand.u32 2147483647, %v1770_v56  ;;  %v2122_v38 = vmov 0.0  }
  0xf1   :  { %v886_v29 = vadd.f32 0.008333334, %v854_v23  ;;  %1175 = vmatprep.mubr.f32.mxu0 %v2122_v38  ;;  %1246 = vmatprep.mubr.f32.mxu1 %v2122_v38  ;;  %v2604_v22 = vsub.f32 %v461_v51, %v493_v27  ;;  %v2607_v13 = vadd.f32 %v2449_v55, %v276_v5  ;;  %v126_v32 = vmul.f32 %v2229_v52, %v2330_v41 }
  0xf2   :  { %v246_v11 = vmul.f32 %v2231_v53, %v2377_v12  ;;  %v1012_v47 = vmul.f32 %v980_v58, %v948_v24  ;;  %v621_v40 = vmul.f32 2.0, %v589_v17  ;;  %v1773_v21 = vor.u32 %v1772_v49, %v1771_v43 }
  0xf3   :  { %v918_v20 = vmul.f32 %v886_v29, %v758_v30  ;;  %v726_v1 = vsub.f32 1.0, %v694_v28  ;;  %v749_v25 = vmul.f32 %v2604_v22, %v2604_v22  ;;  %vm1768_vm13 = vcmp.lt.f32.partialorder %v1767_v7, 8388608.0 }
  0xf4   :  { %v364_v33 = vmul.f32 0.31830987, %v2607_v13  ;;  %v1044_v45 = vadd.f32 %v1012_v47, %v2578_v35  ;;  %v653_v57 = vsub.f32 %v1758_v62, %v621_v40  ;;  %v1774_v3 = vsel %vm1768_vm13, %v1773_v21, %v367_v39 }
  0xf5   :  { %v950_v26 = vadd.f32 -0.16666667, %v918_v20  ;;  %v781_v52 = vmul.f32 2.7557319e-06, %v749_v25  ;;  %v431_v31 = vmul.f32 3.140625, %v1774_v3  ;;  %v278_v14 = vadd.f32 %v246_v11, %v126_v32 }
  0xf6   :  { %v153_v53 = vmul.f32 %v2233_v54, %v2292_v16  ;;  %v1076_v30 = vmul.f32 %v1044_v45, %v724_v50  ;;  %v685_v6 = vmul.f32 2.0, %v653_v57  ;;  %v559_v36 = vmul.f32 0.5, %v1774_v3 }
  0xf7   :  { %v1014_v58 = vmul.f32 %v982_v2, %v950_v26  ;;  %v813_v46 = vadd.f32 -0.0001984127, %v781_v52  ;;  %v463_v63 = vsub.f32 %v2585_v44, %v431_v31  ;;  %v495_v7 = vmul.f32 0.0009676536, %v1774_v3 }
  0xf8   :  { %v1745_v48 = vcvt.f32.s32 %v364_v33  ;;  %1140 = vmatpush1.msra.mxu0 %v1076_v30  ;;  %v973_v39 = vmul.f32 %v749_v25, %v2604_v22  ;;  %v591_v4 = vfloor.f32 %v559_v36  ;;  %v1743_v0 = vand.u32 2147483647, %v364_v33 }
  0xf9   :  { %v1046_v35 = vadd.f32 %v1014_v58, %v2587_v60  ;;  %v717_v62 = vsub.f32 1.0, %v685_v6  ;;  %v845_v10 = vmul.f32 %v813_v46, %v749_v25  ;;  %v2622_v28 = vsub.f32 %v463_v63, %v495_v7 }
  0xfa   :  { %v1746_v50 = vcvt.s32.f32 %v1745_v48  ;;  %v623_v19 = vmul.f32 2.0, %v591_v4  ;;  %v2625_v49 = vadd.f32 %v2449_v55, %v278_v14  ;;  %v305_v44 = vadd.f32 %v2271_v8, %v153_v53 }
  0xfb   :  { %v1078_v2 = vmul.f32 %v1046_v35, %v726_v1  ;;  %v877_v15 = vadd.f32 0.008333334, %v845_v10  ;;  %v751_v60 = vmul.f32 %v2622_v28, %v2622_v28  ;;  %v1748_v37 = vand.u32 2147483648, %v364_v33 }
  0xfc   :  { %v1747_v23 = vand.u32 2147483647, %v1746_v50  ;;  %v655_v56 = vsub.f32 %v1774_v3, %v623_v19  ;;  %vm1744_vm14 = vcmp.lt.f32.partialorder %v1743_v0, 8388608.0  ;;  %v366_v51 = vmul.f32 0.31830987, %v2625_v49  ;;  %v3040_v19 = vld [vmem:[#allocation10_spill] sm:$0xff] }
  0xfd   :  { %1211 = vmatpush1.msra.mxu1 %v1078_v2  ;;  %v2632_v27 = vadd.f32 %v2332_v42, %v305_v44  ;;  %v909_v5 = vmul.f32 %v877_v15, %v749_v25  ;;  %v783_v24 = vmul.f32 2.7557319e-06, %v751_v60  ;;  %v155_v8 = vmul.f32 %v2247_v59, %v2292_v16 }
  0xfe   :  { %v1749_v29 = vor.u32 %v1748_v37, %v1747_v23  ;;  %v975_v17 = vmul.f32 %v751_v60, %v2622_v28  ;;  %v1759_v43 = vand.u32 2147483647, %v366_v51  ;;  %v1761_v32 = vcvt.f32.s32 %v366_v51 }
  0xff   :  { %v304_v11 = vadd.f32 %v2252_v61, %v2326_v34  ;;  %v941_v47 = vadd.f32 -0.16666667, %v909_v5  ;;  %v815_v20 = vadd.f32 -0.0001984127, %v783_v24  ;;  %v393_v21 = vmul.f32 0.31830987, %v2632_v27 }
 0x100   :  { %v1750_v40 = vsel %vm1744_vm14, %v1749_v29, %v364_v33  ;;  %v687_v1 = vmul.f32 2.0, %v655_v56  ;;  %v1764_v26 = vand.u32 2147483648, %v366_v51  ;;  %v1762_v16 = vcvt.s32.f32 %v1761_v32 }
 0x101   :  { %v428_v45 = vmul.f32 3.140625, %v1750_v40  ;;  %v556_v25 = vmul.f32 0.5, %v1750_v40  ;;  %v1005_v57 = vmul.f32 %v973_v39, %v941_v47  ;;  %v847_v3 = vmul.f32 %v815_v20, %v751_v60 }
 0x102   :  { %v492_v52 = vmul.f32 0.0009676536, %v1750_v40  ;;  %vm2641_vm15 = vcmp.lt.f32.partialorder %v1759_v43, 8388608.0  ;;  %v1977_v61 = vcvt.f32.s32 %v393_v21  ;;  %v1763_v30 = vand.u32 2147483647, %v1762_v16 }
 0x103   :  { %v460_v31 = vsub.f32 %v2607_v13, %v428_v45  ;;  %v588_v14 = vfloor.f32 %v556_v25  ;;  %v1037_v34 = vadd.f32 %v1005_v57, %v2604_v22  ;;  %v879_v33 = vadd.f32 0.008333334, %v847_v3 }
 0x104   :  { %v1975_v58 = vand.u32 2147483647, %v393_v21  ;;  %v1978_v46 = vcvt.s32.f32 %v1977_v61  ;;  %v1980_v63 = vand.u32 2147483648, %v393_v21  ;;  %v1765_v35 = vor.u32 %v1764_v26, %v1763_v30 }
 0x105   :  { %v2646_v6 = vsub.f32 %v460_v31, %v492_v52  ;;  %v620_v36 = vmul.f32 2.0, %v588_v14  ;;  %v1069_v7 = vmul.f32 %v1037_v34, %v717_v62  ;;  %v911_v48 = vmul.f32 %v879_v33, %v751_v60  ;;  %v3039_v62 = vld [vmem:[#allocation22_spill] sm:$0xff] }
 0x106   :  { %v307_v13 = vadd.f32 %v2274_v9, %v155_v8  ;;  %v1979_v0 = vand.u32 2147483647, %v1978_v46  ;;  %v2652_v22 = vadd.f32 %v2332_v42, %v304_v11  ;;  %v1766_v50 = vsel %vm2641_vm15, %v1765_v35, %v366_v51 }
 0x107   :  { %v652_v39 = vsub.f32 %v1750_v40, %v620_v36  ;;  %v748_v4 = vmul.f32 %v2646_v6, %v2646_v6  ;;  %1141 = vmatprep.subr.mxu0 %v1069_v7  ;;  %v943_v10 = vadd.f32 -0.16666667, %v911_v48  ;;  %v306_v44 = vadd.f32 %v3040_v19, %v3039_v62 }
 0x108   :  { %v2657_v2 = vadd.f32 %v2332_v42, %v307_v13  ;;  %v719_v9 = vsub.f32 1.0, %v687_v1  ;;  %v430_v60 = vmul.f32 3.140625, %v1766_v50  ;;  %vm1976_vm0 = vcmp.lt.f32.partialorder %v1975_v58, 8388608.0 }
 0x109   :  { %v780_v15 = vmul.f32 2.7557319e-06, %v748_v4  ;;  %v1007_v23 = vmul.f32 %v975_v17, %v943_v10  ;;  %v684_v37 = vmul.f32 2.0, %v652_v39  ;;  %v558_v56 = vmul.f32 0.5, %v1766_v50 }
 0x10a   :  { %v1981_v5 = vor.u32 %v1980_v63, %v1979_v0  ;;  %v462_v29 = vsub.f32 %v2625_v49, %v430_v60  ;;  %v494_v8 = vmul.f32 0.0009676536, %v1766_v50  ;;  %v395_v51 = vmul.f32 0.31830987, %v2657_v2 }
 0x10b   :  { %v812_v24 = vadd.f32 -0.0001984127, %v780_v15  ;;  %v1039_v43 = vadd.f32 %v1007_v23, %v2622_v28  ;;  %v590_v32 = vfloor.f32 %v558_v56  ;;  %v2665_v47 = vmul.f32 0.31830987, %v2652_v22 }
 0x10c   :  { %v1982_v11 = vsel %vm1976_vm0, %v1981_v5, %v393_v21  ;;  %v2667_v40 = vsub.f32 %v462_v29, %v494_v8  ;;  %v1991_v57 = vand.u32 2147483647, %v395_v51  ;;  %v1993_v52 = vcvt.f32.s32 %v395_v51 }
 0x10d   :  { %v844_v20 = vmul.f32 %v812_v24, %v748_v4  ;;  %v457_v17 = vmul.f32 3.140625, %v1982_v11  ;;  %v521_v1 = vmul.f32 0.0009676536, %v1982_v11  ;;  %v1071_v45 = vmul.f32 %v1039_v43, %v719_v9 }
 0x10e   :  { %v622_v25 = vmul.f32 2.0, %v590_v32  ;;  %v585_v26 = vmul.f32 0.5, %v1982_v11  ;;  %v750_v3 = vmul.f32 %v2667_v40, %v2667_v40  ;;  %v716_v21 = vsub.f32 1.0, %v684_v37 }
 0x10f   :  { %v876_v49 = vadd.f32 0.008333334, %v844_v20  ;;  %v489_v28 = vsub.f32 %v2632_v27, %v457_v17  ;;  %1212 = vmatprep.subr.mxu1 %v1071_v45  ;;  %v972_v16 = vmul.f32 %v748_v4, %v2646_v6  ;;  %vm2675_vm2 = vcmp.lt.f32.partialorder %v1991_v57, 8388608.0  ;;  %v2704_v20 = vld [vmem:[%s2987_s3] sm:$0xff]  ;;  %s2124_s3 = smov [#allocation2]  }
 0x110   :  { %v654_v31 = vsub.f32 %v1766_v50, %v622_v25  ;;  %v617_v14 = vfloor.f32 %v585_v26  ;;  %v782_v61 = vmul.f32 2.7557319e-06, %v750_v3  ;;  %v1994_v27 = vcvt.s32.f32 %v1993_v52  ;;  %v3045_v52 = vld [vmem:[#allocation9_spill] sm:$0xff]  ;;  %s1717_s17 = sshll.u32 %s2124_s3, 4  ;;  %s1718_s17 = int_to_ptr.vmem [resolvable:$true] %s1717_s17 }
 0x111   :  { %v908_v53 = vmul.f32 %v876_v49, %v748_v4  ;;  %v2673_v34 = vsub.f32 %v489_v28, %v521_v1  ;;  %v1967_v36 = vand.u32 2147483647, %v2665_v47  ;;  %v1969_v48 = vcvt.f32.s32 %v2665_v47  ;;  %s2076_s18 = scalar_lea.vmem %s1718_s17, 1024  ;;  %p2081_p1 = scmp.lt.s32.totalorder %s1718_s17, %s1718_s17 }
 0x112   :  { %v2679_v30 = vmul.f32 2.0, %v654_v31  ;;  %v649_v58 = vmul.f32 2.0, %v617_v14  ;;  %v814_v63 = vadd.f32 -0.0001984127, %v782_v61  ;;  %v974_v35 = vmul.f32 %v750_v3, %v2667_v40  ;;  %p2077_p0 = scmp.ne.s32.totalorder %s1718_s17, %s2076_s18  ;;  %p2082_p2 = scmp.lt.s32.totalorder %s2076_s18, %s2076_s18 }
 0x113   :  { %v940_v46 = vadd.f32 -0.16666667, %v908_v53  ;;  %v777_v7 = vmul.f32 %v2673_v34, %v2673_v34  ;;  %v1995_v39 = vand.u32 2147483647, %v1994_v27  ;;  %v1996_v4 = vand.u32 2147483648, %v395_v51 }
 0x114   :  { %v681_v13 = vsub.f32 %v1982_v11, %v649_v58  ;;  %v718_v10 = vsub.f32 1.0, %v2679_v30  ;;  %v846_v50 = vmul.f32 %v814_v63, %v750_v3  ;;  %vm2689_vm3 = vcmp.lt.f32.partialorder %v1967_v36, 8388608.0  ;;  %v3046_v30 = vld [vmem:[#allocation16_spill] sm:$0xff]  ;;  %v3047_v58 = vld [vmem:[#allocation11_spill] sm:$0xff]  ;;  %p2083_p3 = por %p2082_p2, %p2081_p1 }
 0x115   :  { %v1004_v0 = vmul.f32 %v972_v16, %v940_v46  ;;  %v809_v62 = vmul.f32 2.7557319e-06, %v777_v7  ;;  %v1997_v9 = vor.u32 %v1996_v4, %v1995_v39  ;;  %v1970_v60 = vcvt.s32.f32 %v1969_v48 }
 0x116   :  { %v2687_v19 = vmul.f32 2.0, %v681_v13  ;;  %v878_v37 = vadd.f32 0.008333334, %v846_v50  ;;  %v2695_v5 = vadd.f32 %v2332_v42, %v306_v44  ;;  %v1001_v24 = vmul.f32 %v777_v7, %v2673_v34  ;;  %p2084_p4 = pnand %p2083_p3, %p2077_p0 }
 0x117   :  { %v1036_v23 = vadd.f32 %v1004_v0, %v2646_v6  ;;  %v841_v56 = vadd.f32 -0.0001984127, %v809_v62  ;;  %v1998_v29 = vsel %vm2675_vm2, %v1997_v9, %v395_v51  ;;  %v1971_v8 = vand.u32 2147483647, %v1970_v60 }
 0x118   :  { %v1972_v43 = vand.u32 2147483648, %v2665_v47  ;;  %v910_v11 = vmul.f32 %v878_v37, %v750_v3  ;;  %v459_v17 = vmul.f32 3.140625, %v1998_v29  ;;  %v745_v42 = vsub.f32 1.0, %v2687_v19 }
 0x119   :  { %v1068_v32 = vmul.f32 %v1036_v23, %v716_v21  ;;  %v873_v6 = vmul.f32 %v841_v56, %v777_v7  ;;  %v587_v44 = vmul.f32 0.5, %v1998_v29  ;;  %v394_v45 = vmul.f32 0.31830987, %v2695_v5 }
 0x11a   :  { %v1973_v1 = vor.u32 %v1972_v43, %v1971_v8  ;;  %v942_v51 = vadd.f32 -0.16666667, %v910_v11  ;;  %v491_v26 = vsub.f32 %v2657_v2, %v459_v17  ;;  %v523_v57 = vmul.f32 0.0009676536, %v1998_v29  ;;  %v3048_v8 = vld [vmem:[#allocation26_spill] sm:$0xff] }
 0x11b   :  { %1142 = vmatpush1.msra.mxu0 %v1068_v32  ;;  %v905_v25 = vadd.f32 0.008333334, %v873_v6  ;;  %v619_v49 = vfloor.f32 %v587_v44  ;;  %v1985_v28 = vcvt.f32.s32 %v394_v45  ;;  %v145_v21 = vmul.f32 %v2233_v54, %v3045_v52 }
 0x11c   :  { %1739 = vmatmul.mubr.msk.f32.vlgmr.msra.gmra.mxu0 %vm1107_vm1, %v2704_v20  ;;  %v1974_v3 = vsel %vm2689_vm3, %v1973_v1, %v2665_v47  ;;  %v1006_v16 = vmul.f32 %v974_v35, %v942_v51  ;;  %v2716_v14 = vsub.f32 %v491_v26, %v523_v57  ;;  %v1983_v33 = vand.u32 2147483647, %v394_v45 }
 0x11d   :  { %v937_v31 = vmul.f32 %v905_v25, %v777_v7  ;;  %v456_v53 = vmul.f32 3.140625, %v1974_v3  ;;  %1317 = vmatprep.mubr.f32.mxu0 %v2122_v38  ;;  %v651_v2 = vmul.f32 2.0, %v619_v49  ;;  %v584_v61 = vmul.f32 0.5, %v1974_v3 }
 0x11e   :  { %v265_v27 = vmul.f32 %v3047_v58, %v3046_v30  ;;  %v1038_v36 = vadd.f32 %v1006_v16, %v2667_v40  ;;  %v779_v46 = vmul.f32 %v2716_v14, %v2716_v14  ;;  %v520_v48 = vmul.f32 0.0009676536, %v1974_v3 }
 0x11f   :  { %v969_v47 = vadd.f32 -0.16666667, %v937_v31  ;;  %v488_v63 = vsub.f32 %v2652_v22, %v456_v53  ;;  %v683_v7 = vsub.f32 %v1998_v29, %v651_v2  ;;  %v616_v35 = vfloor.f32 %v584_v61  ;;  %v3051_v2 = vld [vmem:[#allocation19_spill] sm:$0xff] }
 0x120   :  { %v1986_v13 = vcvt.s32.f32 %v1985_v28  ;;  %v1070_v39 = vmul.f32 %v1038_v36, %v718_v10  ;;  %v811_v0 = vmul.f32 2.7557319e-06, %v779_v46  ;;  %v1988_v50 = vand.u32 2147483648, %v394_v45 }
 0x121   :  { %v1033_v4 = vmul.f32 %v1001_v24, %v969_v47  ;;  %v2725_v62 = vmul.f32 2.0, %v683_v7  ;;  %v2727_v19 = vsub.f32 %v488_v63, %v520_v48  ;;  %v648_v9 = vmul.f32 2.0, %v616_v35 }
 0x122   :  { %v1987_v40 = vand.u32 2147483647, %v1986_v13  ;;  %1213 = vmatpush1.msra.mxu1 %v1070_v39  ;;  %v843_v60 = vadd.f32 -0.0001984127, %v811_v0  ;;  %vm1984_vm4 = vcmp.lt.f32.partialorder %v1983_v33, 8388608.0  ;;  %v297_v22 = vadd.f32 %v265_v27, %v145_v21 }
 0x123   :  { %v1065_v15 = vadd.f32 %v1033_v4, %v2673_v34  ;;  %1740 = vmatmul.mubr.msk.f32.vlgmr.msra.gmra.mxu1 %vm1107_vm1, %v2704_v20  ;;  %v1003_v10 = vmul.f32 %v779_v46, %v2716_v14  ;;  %v680_v23 = vsub.f32 %v1974_v3, %v648_v9  ;;  %v776_v37 = vmul.f32 %v2727_v19, %v2727_v19  ;;  %v3049_v34 = vld [vmem:[#allocation15_spill] sm:$0xff] }
 0x124   :  { %v1989_v56 = vor.u32 %v1988_v50, %v1987_v40  ;;  %v875_v29 = vmul.f32 %v843_v60, %v779_v46  ;;  %v2736_v43 = vadd.f32 %v3048_v8, %v297_v22  ;;  %v267_v32 = vmul.f32 %v3049_v34, %v3046_v30  ;;  %1388 = vmatprep.mubr.f32.mxu1 %v2122_v38  ;;  %v3052_v50 = vld [vmem:[#allocation13_spill] sm:$0xff] }
 0x125   :  { %v1097_v24 = vmul.f32 %v1065_v15, %v745_v42  ;;  %v747_v11 = vsub.f32 1.0, %v2725_v62  ;;  %v808_v6 = vmul.f32 2.7557319e-06, %v776_v37  ;;  %v147_v44 = vmul.f32 %v2247_v59, %v3045_v52  ;;  %v3050_v52 = vld [vmem:[#allocation12_spill] sm:$0xff] }
 0x126   :  { %v1990_v17 = vsel %vm1984_vm4, %v1989_v56, %v394_v45  ;;  %v907_v1 = vadd.f32 0.008333334, %v875_v29  ;;  %v712_v51 = vmul.f32 2.0, %v680_v23  ;;  %v1000_v57 = vmul.f32 %v776_v37, %v2727_v19  ;;  %v3053_v62 = vld [vmem:[#allocation20_spill] sm:$0xff] }
 0x127   :  { %1277 = vmatprep.subr.mxu0 %v1097_v24  ;;  %v458_v42 = vmul.f32 3.140625, %v1990_v17  ;;  %v586_v25 = vmul.f32 0.5, %v1990_v17  ;;  %v840_v26 = vadd.f32 -0.0001984127, %v808_v6  ;;  %v522_v49 = vmul.f32 0.0009676536, %v1990_v17 }
 0x128   :  { %v385_v3 = vmul.f32 0.31830987, %v2736_v43  ;;  %v939_v28 = vmul.f32 %v907_v1, %v779_v46  ;;  %v299_v16 = vadd.f32 %v267_v32, %v147_v44  ;;  %v296_v61 = vadd.f32 %v3051_v2, %v3050_v52 }
 0x129   :  { %v490_v38 = vsub.f32 %v2695_v5, %v458_v42  ;;  %v618_v21 = vfloor.f32 %v586_v25  ;;  %v872_v45 = vmul.f32 %v840_v26, %v776_v37  ;;  %v744_v47 = vsub.f32 1.0, %v712_v51 }
 0x12a   :  { %v1911_v31 = vand.u32 2147483647, %v385_v3  ;;  %v1913_v53 = vcvt.f32.s32 %v385_v3  ;;  %v971_v33 = vadd.f32 -0.16666667, %v939_v28  ;;  %v2752_v36 = vadd.f32 %v3048_v8, %v299_v16 }
 0x12b   :  { %v2749_v30 = vsub.f32 %v490_v38, %v522_v49  ;;  %v650_v27 = vmul.f32 2.0, %v618_v21  ;;  %v904_v63 = vadd.f32 0.008333334, %v872_v45  ;;  %v2755_v5 = vadd.f32 %v3048_v8, %v296_v61 }
 0x12c   :  { %v1914_v46 = vcvt.s32.f32 %v1913_v53  ;;  %v1035_v7 = vmul.f32 %v1003_v10, %v971_v33  ;;  %v387_v13 = vmul.f32 0.31830987, %v2752_v36  ;;  %v1916_v0 = vand.u32 2147483648, %v385_v3 }
 0x12d   :  { %v682_v48 = vsub.f32 %v1990_v17, %v650_v27  ;;  %v778_v35 = vmul.f32 %v2749_v30, %v2749_v30  ;;  %v936_v39 = vmul.f32 %v904_v63, %v776_v37  ;;  %v298_v9 = vadd.f32 %v3053_v62, %v3052_v50  ;;  %v3057_v62 = vld [vmem:[#allocation14_spill] sm:$0xff] }
 0x12e   :  { %v1915_v4 = vand.u32 2147483647, %v1914_v46  ;;  %v1067_v40 = vadd.f32 %v1035_v7, %v2716_v14  ;;  %vm1912_vm5 = vcmp.lt.f32.partialorder %v1911_v31, 8388608.0  ;;  %v1929_v23 = vcvt.f32.s32 %v387_v13 }
 0x12f   :  { %v2763_v15 = vmul.f32 2.0, %v682_v48  ;;  %v810_v60 = vmul.f32 2.7557319e-06, %v778_v35  ;;  %v968_v22 = vadd.f32 -0.16666667, %v936_v39  ;;  %v1002_v37 = vmul.f32 %v778_v35, %v2749_v30 }
 0x130   :  { %v1917_v10 = vor.u32 %v1916_v0, %v1915_v4  ;;  %v384_v56 = vmul.f32 0.31830987, %v2755_v5  ;;  %v1099_v24 = vmul.f32 %v1067_v40, %v747_v11  ;;  %v1927_v32 = vand.u32 2147483647, %v387_v13 }
 0x131   :  { %v842_v29 = vadd.f32 -0.0001984127, %v810_v60  ;;  %v1032_v6 = vmul.f32 %v1000_v57, %v968_v22  ;;  %v746_v17 = vsub.f32 1.0, %v2763_v15  ;;  %v1930_v1 = vcvt.s32.f32 %v1929_v23 }
 0x132   :  { %v1918_v44 = vsel %vm1912_vm5, %v1917_v10, %v385_v3  ;;  %1348 = vmatprep.subr.mxu1 %v1099_v24  ;;  %v1932_v25 = vand.u32 2147483648, %v387_v13  ;;  %v1903_v28 = vand.u32 2147483647, %v384_v56  ;;  %v1905_v38 = vcvt.f32.s32 %v384_v56 }
 0x133   :  { %v874_v14 = vmul.f32 %v842_v29, %v778_v35  ;;  %v449_v51 = vmul.f32 3.140625, %v1918_v44  ;;  %v577_v42 = vmul.f32 0.5, %v1918_v44  ;;  %v1064_v26 = vadd.f32 %v1032_v6, %v2727_v19 }
 0x134   :  { %v1931_v49 = vand.u32 2147483647, %v1930_v1  ;;  %v513_v16 = vmul.f32 0.0009676536, %v1918_v44  ;;  %vm1928_vm6 = vcmp.lt.f32.partialorder %v1927_v32, 8388608.0  ;;  %v1906_v3 = vcvt.s32.f32 %v1905_v38 }
 0x135   :  { %v906_v11 = vadd.f32 0.008333334, %v874_v14  ;;  %v481_v21 = vsub.f32 %v2736_v43, %v449_v51  ;;  %v609_v45 = vfloor.f32 %v577_v42  ;;  %v1096_v57 = vmul.f32 %v1064_v26, %v744_v47 }
 0x136   :  { %v1933_v31 = vor.u32 %v1932_v25, %v1931_v49  ;;  %v2773_v61 = vadd.f32 %v3048_v8, %v298_v9  ;;  %vm2775_vm7 = vcmp.lt.f32.partialorder %v1903_v28, 8388608.0  ;;  %v1907_v43 = vand.u32 2147483647, %v1906_v3  ;;  %v3056_v8 = vld [vmem:[#allocation21_spill] sm:$0xff] }
 0x137   :  { %v938_v53 = vmul.f32 %v906_v11, %v778_v35  ;;  %v2770_v52 = vsub.f32 %v481_v21, %v513_v16  ;;  %v641_v2 = vmul.f32 2.0, %v609_v45  ;;  %1278 = vmatpush1.msra.mxu0 %v1096_v57  ;;  %v1908_v27 = vand.u32 2147483648, %v384_v56 }
 0x138   :  { %v1934_v19 = vsel %vm1928_vm6, %v1933_v31, %v387_v13  ;;  %v386_v39 = vmul.f32 0.31830987, %v2773_v61  ;;  %v137_v4 = vmul.f32 %v2233_v54, %v3056_v8  ;;  %v257_v9 = vmul.f32 %v3047_v58, %v3057_v62 }
 0x139   :  { %v970_v63 = vadd.f32 -0.16666667, %v938_v53  ;;  %v673_v47 = vsub.f32 %v1918_v44, %v641_v2  ;;  %v769_v46 = vmul.f32 %v2770_v52, %v2770_v52  ;;  %v451_v7 = vmul.f32 3.140625, %v1934_v19 }
 0x13a   :  { %v579_v48 = vmul.f32 0.5, %v1934_v19  ;;  %v1909_v35 = vor.u32 %v1908_v27, %v1907_v43  ;;  %v515_v50 = vmul.f32 0.0009676536, %v1934_v19  ;;  %v1919_v44 = vand.u32 2147483647, %v386_v39 }
 0x13b   :  { %v1034_v13 = vmul.f32 %v1002_v37, %v970_v63  ;;  %v801_v0 = vmul.f32 2.7557319e-06, %v769_v46  ;;  %v705_v40 = vmul.f32 2.0, %v673_v47  ;;  %v483_v15 = vsub.f32 %v2752_v36, %v451_v7 }
 0x13c   :  { %v611_v60 = vfloor.f32 %v579_v48  ;;  %v1910_v22 = vsel %vm2775_vm7, %v1909_v35, %v384_v56  ;;  %v993_v24 = vmul.f32 %v769_v46, %v2770_v52  ;;  %v289_v38 = vadd.f32 %v257_v9, %v137_v4 }
 0x13d   :  { %v1066_v10 = vadd.f32 %v1034_v13, %v2749_v30  ;;  %v833_v23 = vadd.f32 -0.0001984127, %v801_v0  ;;  %v448_v29 = vmul.f32 3.140625, %v1910_v22  ;;  %v2791_v32 = vsub.f32 %v483_v15, %v515_v50  ;;  %v3060_v0 = vld [vmem:[#allocation23_spill] sm:$0xff]  ;;  %v3061_v50 = vld [vmem:[#allocation17_spill] sm:$0xff] }
 0x13e   :  { %v643_v37 = vmul.f32 2.0, %v611_v60  ;;  %v576_v6 = vmul.f32 0.5, %v1910_v22  ;;  %v512_v36 = vmul.f32 0.0009676536, %v1910_v22  ;;  %v1921_v30 = vcvt.f32.s32 %v386_v39 }
 0x13f   :  { %v1098_v1 = vmul.f32 %v1066_v10, %v746_v17  ;;  %v865_v14 = vmul.f32 %v833_v23, %v769_v46  ;;  %v480_v51 = vsub.f32 %v2755_v5, %v448_v29  ;;  %v771_v56 = vmul.f32 %v2791_v32, %v2791_v32 }
 0x140   :  { %v675_v42 = vsub.f32 %v1934_v19, %v643_v37  ;;  %v608_v25 = vfloor.f32 %v576_v6  ;;  %v737_v26 = vsub.f32 1.0, %v705_v40  ;;  %vm2800_vm8 = vcmp.lt.f32.partialorder %v1919_v44, 8388608.0 }
 0x141   :  { %1349 = vmatpush1.msra.mxu1 %v1098_v1  ;;  %v897_v49 = vadd.f32 0.008333334, %v865_v14  ;;  %v2796_v28 = vsub.f32 %v480_v51, %v512_v36  ;;  %v803_v21 = vmul.f32 2.7557319e-06, %v771_v56  ;;  %v1922_v57 = vcvt.s32.f32 %v1921_v30 }
 0x142   :  { %v2798_v11 = vmul.f32 2.0, %v675_v42  ;;  %v640_v17 = vmul.f32 2.0, %v608_v25  ;;  %v2807_v31 = vadd.f32 %v2391_v18, %v289_v38  ;;  %v1924_v19 = vand.u32 2147483648, %v386_v39 }
 0x143   :  { %v929_v5 = vmul.f32 %v897_v49, %v769_v46  ;;  %v768_v45 = vmul.f32 %v2796_v28, %v2796_v28  ;;  %v835_v53 = vadd.f32 -0.0001984127, %v803_v21  ;;  %v995_v43 = vmul.f32 %v771_v56, %v2791_v32 }
 0x144   :  { %v739_v3 = vsub.f32 1.0, %v2798_v11  ;;  %v672_v2 = vsub.f32 %v1910_v22, %v640_v17  ;;  %v1923_v63 = vand.u32 2147483647, %v1922_v57  ;;  %v377_v7 = vmul.f32 0.31830987, %v2807_v31 }
 0x145   :  { %v961_v33 = vadd.f32 -0.16666667, %v929_v5  ;;  %v800_v27 = vmul.f32 2.7557319e-06, %v768_v45  ;;  %v867_v47 = vmul.f32 %v835_v53, %v771_v56  ;;  %v992_v46 = vmul.f32 %v768_v45, %v2796_v28 }
 0x146   :  { %v139_v48 = vmul.f32 %v2247_v59, %v3056_v8  ;;  %v1925_v13 = vor.u32 %v1924_v19, %v1923_v63  ;;  %v288_v9 = vadd.f32 %v3061_v50, %v3060_v0  ;;  %v704_v15 = vmul.f32 2.0, %v672_v2 }
 0x147   :  { %v1025_v35 = vmul.f32 %v993_v24, %v961_v33  ;;  %v832_v4 = vadd.f32 -0.0001984127, %v800_v27  ;;  %v899_v40 = vadd.f32 0.008333334, %v867_v47  ;;  %v1849_v60 = vcvt.f32.s32 %v377_v7  ;;  %v3064_v33 = vld [vmem:[#allocation25_spill] sm:$0xff] }
 0x148   :  { %v259_v22 = vmul.f32 %v3049_v34, %v3057_v62  ;;  %v1926_v29 = vsel %vm2800_vm8, %v1925_v13, %v386_v39  ;;  %v1847_v37 = vand.u32 2147483647, %v377_v7  ;;  %v1852_v44 = vand.u32 2147483648, %v377_v7  ;;  %v3062_v39 = vld [vmem:[#allocation24_spill] sm:$0xff] }
 0x149   :  { %v1057_v10 = vadd.f32 %v1025_v35, %v2770_v52  ;;  %v864_v23 = vmul.f32 %v832_v4, %v768_v45  ;;  %v931_v8 = vmul.f32 %v899_v40, %v771_v56  ;;  %v450_v24 = vmul.f32 3.140625, %v1926_v29  ;;  %v3063_v56 = vld [vmem:[#allocation18_spill] sm:$0xff] }
 0x14a   :  { %v578_v6 = vmul.f32 0.5, %v1926_v29  ;;  %v514_v51 = vmul.f32 0.0009676536, %v1926_v29  ;;  %v1850_v36 = vcvt.s32.f32 %v1849_v60  ;;  %v291_v62 = vadd.f32 %v259_v22, %v139_v48 }
 0x14b   :  { %v1089_v1 = vmul.f32 %v1057_v10, %v737_v26  ;;  %v896_v14 = vadd.f32 0.008333334, %v864_v23  ;;  %v963_v42 = vadd.f32 -0.16666667, %v931_v8  ;;  %v482_v25 = vsub.f32 %v2773_v61, %v450_v24 }
 0x14c   :  { %v610_v30 = vfloor.f32 %v578_v6  ;;  %v1851_v49 = vand.u32 2147483647, %v1850_v36  ;;  %v2824_v38 = vadd.f32 %v2391_v18, %v288_v9  ;;  %v290_v11 = vadd.f32 %v3063_v56, %v3062_v39 }
 0x14d   :  { %1279 = vmatprep.subr.mxu0 %v1089_v1  ;;  %v928_v52 = vmul.f32 %v896_v14, %v768_v45  ;;  %v1027_v21 = vmul.f32 %v995_v43, %v963_v42  ;;  %v2828_v17 = vsub.f32 %v482_v25, %v514_v51  ;;  %v2831_v16 = vadd.f32 %v2391_v18, %v291_v62 }
 0x14e   :  { %v642_v26 = vmul.f32 2.0, %v610_v30  ;;  %vm1848_vm9 = vcmp.lt.f32.partialorder %v1847_v37, 8388608.0  ;;  %v1853_v61 = vor.u32 %v1852_v44, %v1851_v49  ;;  %v376_v57 = vmul.f32 0.31830987, %v2824_v38 }
 0x14f   :  { %v960_v5 = vadd.f32 -0.16666667, %v928_v52  ;;  %v1059_v45 = vadd.f32 %v1027_v21, %v2791_v32  ;;  %v770_v2 = vmul.f32 %v2828_v17, %v2828_v17  ;;  %v379_v19 = vmul.f32 0.31830987, %v2831_v16 }
 0x150   :  { %v674_v53 = vsub.f32 %v1926_v29, %v642_v26  ;;  %v2840_v43 = vadd.f32 %v2449_v55, %v3064_v33  ;;  %v736_v27 = vsub.f32 1.0, %v704_v15  ;;  %v1854_v47 = vsel %vm1848_vm9, %v1853_v61, %v377_v7 }
 0x151   :  { %v1024_v63 = vmul.f32 %v992_v46, %v960_v5  ;;  %v1091_v48 = vmul.f32 %v1059_v45, %v739_v3  ;;  %v802_v4 = vmul.f32 2.7557319e-06, %v770_v2  ;;  %v2845_v13 = vadd.f32 %v2391_v18, %v290_v11 }
 0x152   :  { %v2842_v35 = vmul.f32 2.0, %v674_v53  ;;  %v441_v0 = vmul.f32 3.140625, %v1854_v47  ;;  %v569_v50 = vmul.f32 0.5, %v1854_v47  ;;  %v1841_v9 = vcvt.f32.s32 %v376_v57 }
 0x153   :  { %v1056_v32 = vadd.f32 %v1024_v63, %v2796_v28  ;;  %1350 = vmatprep.subr.mxu1 %v1091_v48  ;;  %v834_v40 = vadd.f32 -0.0001984127, %v802_v4  ;;  %v1863_v60 = vand.u32 2147483647, %v379_v19  ;;  %v1865_v22 = vcvt.f32.s32 %v379_v19 }
 0x154   :  { %v1839_v10 = vand.u32 2147483647, %v376_v57  ;;  %v473_v46 = vsub.f32 %v2807_v31, %v441_v0  ;;  %v505_v3 = vmul.f32 0.0009676536, %v1854_v47  ;;  %v601_v7 = vfloor.f32 %v569_v50 }
 0x155   :  { %v1088_v15 = vmul.f32 %v1056_v32, %v736_v27  ;;  %v738_v23 = vsub.f32 1.0, %v2842_v35  ;;  %v866_v29 = vmul.f32 %v834_v40, %v770_v2  ;;  %v1866_v18 = vcvt.s32.f32 %v1865_v22 }
 0x156   :  { %v1868_v37 = vand.u32 2147483648, %v379_v19  ;;  %v2850_v28 = vsub.f32 %v473_v46, %v505_v3  ;;  %v633_v8 = vmul.f32 2.0, %v601_v7  ;;  %vm2852_vm10 = vcmp.lt.f32.partialorder %v1863_v60, 8388608.0 }
 0x157   :  { %1280 = vmatpush1.msra.mxu0 %v1088_v15  ;;  %v1842_v6 = vcvt.s32.f32 %v1841_v9  ;;  %v898_v44 = vadd.f32 0.008333334, %v866_v29  ;;  %v994_v1 = vmul.f32 %v770_v2, %v2828_v17  ;;  %v1867_v31 = vand.u32 2147483647, %v1866_v18  ;;  %v3069_v29 = vld [vmem:[#allocation27_spill] sm:$0xff] }
 0x158   :  { %v378_v14 = vmul.f32 0.31830987, %v2845_v13  ;;  %v665_v51 = vsub.f32 %v1854_v47, %v633_v8  ;;  %v761_v36 = vmul.f32 %v2850_v28, %v2850_v28  ;;  %v1844_v25 = vand.u32 2147483648, %v376_v57 }
 0x159   :  { %v1843_v42 = vand.u32 2147483647, %v1842_v6  ;;  %v930_v30 = vmul.f32 %v898_v44, %v770_v2  ;;  %v1869_v62 = vor.u32 %v1868_v37, %v1867_v31  ;;  %vm1840_vm11 = vcmp.lt.f32.partialorder %v1839_v10, 8388608.0 }
 0x15a   :  { %v1855_v52 = vand.u32 2147483647, %v378_v14  ;;  %v1857_v49 = vcvt.f32.s32 %v378_v14  ;;  %v793_v39 = vmul.f32 2.7557319e-06, %v761_v36  ;;  %v129_v11 = vmul.f32 %v2233_v54, %v2330_v41 }
 0x15b   :  { %v1845_v56 = vor.u32 %v1844_v25, %v1843_v42  ;;  %v962_v21 = vadd.f32 -0.16666667, %v930_v30  ;;  %v1870_v26 = vsel %vm2852_vm10, %v1869_v62, %v379_v19  ;;  %v249_v61 = vmul.f32 %v3047_v58, %v2377_v12 }
 0x15c   :  { %v1858_v5 = vcvt.s32.f32 %v1857_v49  ;;  %v697_v45 = vmul.f32 2.0, %v665_v51  ;;  %v825_v53 = vadd.f32 -0.0001984127, %v793_v39  ;;  %v443_v2 = vmul.f32 3.140625, %v1870_v26 }
 0x15d   :  { %vm2866_vm12 = vcmp.lt.f32.partialorder %v1855_v52, 8388608.0  ;;  %v1026_v27 = vmul.f32 %v994_v1, %v962_v21  ;;  %v571_v63 = vmul.f32 0.5, %v1870_v26  ;;  %v1846_v47 = vsel %vm1840_vm11, %v1845_v56, %v376_v57 }
 0x15e   :  { %v1859_v48 = vand.u32 2147483647, %v1858_v5  ;;  %v857_v54 = vmul.f32 %v825_v53, %v761_v36  ;;  %v475_v35 = vsub.f32 %v2831_v16, %v443_v2  ;;  %v507_v4 = vmul.f32 0.0009676536, %v1870_v26 }
 0x15f   :  { %v440_v19 = vmul.f32 3.140625, %v1846_v47  ;;  %v1058_v32 = vadd.f32 %v1026_v27, %v2828_v17  ;;  %v603_v0 = vfloor.f32 %v571_v63  ;;  %v568_v58 = vmul.f32 0.5, %v1846_v47 }
 0x160   :  { %v1860_v50 = vand.u32 2147483648, %v378_v14  ;;  %v889_v9 = vadd.f32 0.008333334, %v857_v54  ;;  %v2872_v40 = vsub.f32 %v475_v35, %v507_v4  ;;  %v504_v22 = vmul.f32 0.0009676536, %v1846_v47 }
 0x161   :  { %v472_v60 = vsub.f32 %v2824_v38, %v440_v19  ;;  %v1090_v10 = vmul.f32 %v1058_v32, %v738_v23  ;;  %v635_v15 = vmul.f32 2.0, %v603_v0  ;;  %v600_v57 = vfloor.f32 %v568_v58 }
 0x162   :  { %v1861_v46 = vor.u32 %v1860_v50, %v1859_v48  ;;  %v921_v3 = vmul.f32 %v889_v9, %v761_v36  ;;  %v763_v16 = vmul.f32 %v2872_v40, %v2872_v40  ;;  %v281_v17 = vadd.f32 %v249_v61, %v129_v11 }
 0x163   :  { %v2877_v7 = vsub.f32 %v472_v60, %v504_v22  ;;  %v2880_v18 = vmul.f32 0.31830987, %v3069_v29  ;;  %1351 = vmatpush1.msra.mxu1 %v1090_v10  ;;  %v985_v37 = vmul.f32 %v761_v36, %v2850_v28  ;;  %v632_v8 = vmul.f32 2.0, %v600_v57 }
 0x164   :  { %v1862_v38 = vsel %vm2866_vm12, %v1861_v46, %v378_v14  ;;  %v953_v23 = vadd.f32 -0.16666667, %v921_v3  ;;  %v795_v24 = vmul.f32 2.7557319e-06, %v763_v16  ;;  %v2888_v44 = vadd.f32 %v2449_v55, %v281_v17 }
 0x165   :  { %v760_v6 = vmul.f32 %v2877_v7, %v2877_v7  ;;  %v2891_v1 = vmul.f32 0.31830987, %v2840_v43  ;;  %v729_v31 = vsub.f32 1.0, %v697_v45  ;;  %v667_v51 = vsub.f32 %v1870_v26, %v635_v15 }
 0x166   :  { %v442_v42 = vmul.f32 3.140625, %v1862_v38  ;;  %v1017_v25 = vmul.f32 %v985_v37, %v953_v23  ;;  %v827_v36 = vadd.f32 -0.0001984127, %v795_v24  ;;  %v131_v14 = vmul.f32 %v2247_v59, %v2330_v41 }
 0x167   :  { %v792_v30 = vmul.f32 2.7557319e-06, %v760_v6  ;;  %v664_v62 = vsub.f32 %v1846_v47, %v632_v8  ;;  %v506_v49 = vmul.f32 0.0009676536, %v1862_v38  ;;  %v570_v39 = vmul.f32 0.5, %v1862_v38 }
 0x168   :  { %v474_v52 = vsub.f32 %v2845_v13, %v442_v42  ;;  %v1049_v56 = vadd.f32 %v1017_v25, %v2850_v28  ;;  %v859_v11 = vmul.f32 %v827_v36, %v763_v16  ;;  %v369_v5 = vmul.f32 0.31830987, %v2888_v44 }
 0x169   :  { %v824_v21 = vadd.f32 -0.0001984127, %v792_v30  ;;  %v699_v61 = vmul.f32 2.0, %v667_v51  ;;  %v602_v45 = vfloor.f32 %v570_v39  ;;  %v251_v53 = vmul.f32 %v3049_v34, %v2377_v12 }
 0x16a   :  { %v2898_v26 = vsub.f32 %v474_v52, %v506_v49  ;;  %v1081_v2 = vmul.f32 %v1049_v56, %v729_v31  ;;  %v891_v59 = vadd.f32 0.008333334, %v859_v11  ;;  %v987_v41 = vmul.f32 %v763_v16, %v2872_v40 }
 0x16b   :  { %v856_v13 = vmul.f32 %v824_v21, %v760_v6  ;;  %v984_v33 = vmul.f32 %v760_v6, %v2877_v7  ;;  %v634_v27 = vmul.f32 2.0, %v602_v45  ;;  %v1785_v63 = vcvt.f32.s32 %v369_v5 }
 0x16c   :  { %v762_v28 = vmul.f32 %v2898_v26, %v2898_v26  ;;  %1281 = vmatprep.subr.mxu0 %v1081_v2  ;;  %v923_v47 = vmul.f32 %v891_v59, %v763_v16  ;;  %v696_v48 = vmul.f32 2.0, %v664_v62  ;;  %v283_v35 = vadd.f32 %v251_v53, %v131_v14 }
 0x16d   :  { %v888_v54 = vadd.f32 0.008333334, %v856_v13  ;;  %v731_v4 = vsub.f32 1.0, %v699_v61  ;;  %v1783_v12 = vand.u32 2147483647, %v369_v5  ;;  %v1786_v34 = vcvt.s32.f32 %v1785_v63 }
 0x16e   :  { %v794_v19 = vmul.f32 2.7557319e-06, %v762_v28  ;;  %v955_v32 = vadd.f32 -0.16666667, %v923_v47  ;;  %v1788_v58 = vand.u32 2147483648, %v369_v5  ;;  %v2907_v50 = vadd.f32 %v2449_v55, %v283_v35 }
 0x16f   :  { %v920_v0 = vmul.f32 %v888_v54, %v760_v6  ;;  %v666_v9 = vsub.f32 %v1862_v38, %v634_v27  ;;  %v1787_v22 = vand.u32 2147483647, %v1786_v34  ;;  %v1777_v10 = vcvt.f32.s32 %v2880_v18 }
 0x170   :  { %v826_v60 = vadd.f32 -0.0001984127, %v794_v19  ;;  %v1019_v15 = vmul.f32 %v987_v41, %v955_v32  ;;  %v728_v57 = vsub.f32 1.0, %v696_v48  ;;  %v371_v3 = vmul.f32 0.31830987, %v2907_v50 }
 0x171   :  { %v952_v46 = vadd.f32 -0.16666667, %v920_v0  ;;  %vm1784_vm13 = vcmp.lt.f32.partialorder %v1783_v12, 8388608.0  ;;  %v1789_v17 = vor.u32 %v1788_v58, %v1787_v22  ;;  %v1778_v37 = vcvt.s32.f32 %v1777_v10 }
 0x172   :  { %v858_v16 = vmul.f32 %v826_v60, %v762_v28  ;;  %v1051_v8 = vadd.f32 %v1019_v15, %v2872_v40  ;;  %v986_v55 = vmul.f32 %v762_v28, %v2898_v26  ;;  %v1801_v24 = vcvt.f32.s32 %v371_v3 }
 0x173   :  { %v1016_v23 = vmul.f32 %v984_v33, %v952_v46  ;;  %v698_v38 = vmul.f32 2.0, %v666_v9  ;;  %v2913_v31 = vsel %vm1784_vm13, %v1789_v17, %v369_v5  ;;  %v1775_v51 = vand.u32 2147483647, %v2880_v18 }
 0x174   :  { %v890_v6 = vadd.f32 0.008333334, %v858_v16  ;;  %v1083_v42 = vmul.f32 %v1051_v8, %v731_v4  ;;  %v433_v36 = vmul.f32 3.140625, %v2913_v31  ;;  %v1779_v30 = vand.u32 2147483647, %v1778_v37 }
 0x175   :  { %v1048_v25 = vadd.f32 %v1016_v23, %v2877_v7  ;;  %v561_v62 = vmul.f32 0.5, %v2913_v31  ;;  %v1799_v40 = vand.u32 2147483647, %v371_v3  ;;  %v1802_v52 = vcvt.s32.f32 %v1801_v24 }
 0x176   :  { %v922_v14 = vmul.f32 %v890_v6, %v762_v28  ;;  %1352 = vmatprep.subr.mxu1 %v1083_v42  ;;  %v465_v39 = vsub.f32 %v2888_v44, %v433_v36  ;;  %v497_v56 = vmul.f32 0.0009676536, %v2913_v31  ;;  %v1780_v11 = vand.u32 2147483648, %v2880_v18 }
 0x177   :  { %v1080_v49 = vmul.f32 %v1048_v25, %v728_v57  ;;  %v1803_v5 = vand.u32 2147483647, %v1802_v52  ;;  %v1804_v61 = vand.u32 2147483648, %v371_v3  ;;  %v1793_v7 = vcvt.f32.s32 %v2891_v1 }
 0x178   :  { %v954_v21 = vadd.f32 -0.16666667, %v922_v14  ;;  %v529_v45 = vsub.f32 %v465_v39, %v497_v56  ;;  %v593_v53 = vfloor.f32 %v561_v62  ;;  %v1781_v2 = vor.u32 %v1780_v11, %v1779_v30 }
 0x179   :  { %1282 = vmatpush1.msra.mxu0 %v1080_v49  ;;  %v1805_v41 = vor.u32 %v1804_v61, %v1803_v5  ;;  %vm1776_vm14 = vcmp.lt.f32.partialorder %v1775_v51, 8388608.0  ;;  %v730_v13 = vsub.f32 1.0, %v698_v38  ;;  %vm1800_vm15 = vcmp.lt.f32.partialorder %v1799_v40, 8388608.0 }
 0x17a   :  { %v1018_v59 = vmul.f32 %v986_v55, %v954_v21  ;;  %v753_v33 = vmul.f32 %v529_v45, %v529_v45  ;;  %v2924_v44 = vsel %vm1776_vm14, %v1781_v2, %v2880_v18  ;;  %v1794_v47 = vcvt.s32.f32 %v1793_v7 }
 0x17b   :  { %v1806_v28 = vsel %vm1800_vm15, %v1805_v41, %v371_v3  ;;  %v432_v63 = vmul.f32 3.140625, %v2924_v44  ;;  %v625_v48 = vmul.f32 2.0, %v593_v53  ;;  %v1791_v4 = vand.u32 2147483647, %v2891_v1 }
 0x17c   :  { %v1050_v27 = vadd.f32 %v1018_v59, %v2898_v26  ;;  %v785_v54 = vmul.f32 2.7557319e-06, %v753_v33  ;;  %v435_v35 = vmul.f32 3.140625, %v1806_v28  ;;  %v499_v12 = vmul.f32 0.0009676536, %v1806_v28 }
 0x17d   :  { %v563_v34 = vmul.f32 0.5, %v1806_v28  ;;  %v464_v32 = vsub.f32 %v3069_v29, %v432_v63  ;;  %v496_v58 = vmul.f32 0.0009676536, %v2924_v44  ;;  %v560_v26 = vmul.f32 0.5, %v2924_v44 }
 0x17e   :  { %v1082_v19 = vmul.f32 %v1050_v27, %v730_v13  ;;  %v817_v0 = vadd.f32 -0.0001984127, %v785_v54  ;;  %v467_v18 = vsub.f32 %v2907_v50, %v435_v35  ;;  %v1795_v9 = vand.u32 2147483647, %v1794_v47 }
 0x17f   :  { %v1796_v60 = vand.u32 2147483648, %v2891_v1  ;;  %v528_v15 = vsub.f32 %v464_v32, %v496_v58  ;;  %v657_v57 = vsub.f32 %v2913_v31, %v625_v48  ;;  %v595_v46 = vfloor.f32 %v563_v34 }
 0x180   :  { %1353 = vmatpush1.msra.mxu1 %v1082_v19  ;;  %v849_v22 = vmul.f32 %v817_v0, %v753_v33  ;;  %v531_v10 = vsub.f32 %v467_v18, %v499_v12  ;;  %vm1792_vm0 = vcmp.lt.f32.partialorder %v1791_v4, 8388608.0  ;;  %v592_v17 = vfloor.f32 %v560_v26 }
 0x181   :  { %v1797_v3 = vor.u32 %v1796_v60, %v1795_v9  ;;  %v752_v50 = vmul.f32 %v528_v15, %v528_v15  ;;  %v689_v55 = vmul.f32 2.0, %v657_v57  ;;  %v977_v24 = vmul.f32 %v753_v33, %v529_v45 }
 0x182   :  { %v881_v29 = vadd.f32 0.008333334, %v849_v22  ;;  %v755_v16 = vmul.f32 %v531_v10, %v531_v10  ;;  %v627_v42 = vmul.f32 2.0, %v595_v46  ;;  %v624_v36 = vmul.f32 2.0, %v592_v17 }
 0x183   :  { %v1798_v37 = vsel %vm1792_vm0, %v1797_v3, %v2891_v1  ;;  %v784_v38 = vmul.f32 2.7557319e-06, %v752_v50  ;;  %v721_v1 = vsub.f32 1.0, %v689_v55  ;;  %v976_v63 = vmul.f32 %v752_v50, %v528_v15 }
 0x184   :  { %v913_v8 = vmul.f32 %v881_v29, %v753_v33  ;;  %v787_v23 = vmul.f32 2.7557319e-06, %v755_v16  ;;  %v434_v6 = vmul.f32 3.140625, %v1798_v37  ;;  %v498_v14 = vmul.f32 0.0009676536, %v1798_v37 }
 0x185   :  { %v816_v31 = vadd.f32 -0.0001984127, %v784_v38  ;;  %v562_v62 = vmul.f32 0.5, %v1798_v37  ;;  %v659_v11 = vsub.f32 %v1806_v28, %v627_v42  ;;  %v656_v5 = vsub.f32 %v2924_v44, %v624_v36 }
 0x186   :  { %v945_v51 = vadd.f32 -0.16666667, %v913_v8  ;;  %v819_v25 = vadd.f32 -0.0001984127, %v787_v23  ;;  %v466_v30 = vsub.f32 %v2840_v43, %v434_v6  ;;  %v979_v27 = vmul.f32 %v755_v16, %v531_v10 }
 0x187   :  { %v848_v49 = vmul.f32 %v816_v31, %v752_v50  ;;  %v594_v7 = vfloor.f32 %v562_v62  ;;  %v691_v43 = vmul.f32 2.0, %v659_v11  ;;  %v688_v47 = vmul.f32 2.0, %v656_v5 }
 0x188   :  { %v1009_v40 = vmul.f32 %v977_v24, %v945_v51  ;;  %v851_v52 = vmul.f32 %v819_v25, %v755_v16  ;;  %v530_v39 = vsub.f32 %v466_v30, %v498_v14 }
 0x189   :  { %v880_v61 = vadd.f32 0.008333334, %v848_v49  ;;  %v626_v54 = vmul.f32 2.0, %v594_v7  ;;  %v723_v44 = vsub.f32 1.0, %v691_v43  ;;  %v720_v12 = vsub.f32 1.0, %v688_v47 }
 0x18a   :  { %v1041_v56 = vadd.f32 %v1009_v40, %v529_v45  ;;  %v883_v21 = vadd.f32 0.008333334, %v851_v52  ;;  %v754_v53 = vmul.f32 %v530_v39, %v530_v39 }
 0x18b   :  { %v912_v41 = vmul.f32 %v880_v61, %v752_v50  ;;  %v658_v32 = vsub.f32 %v1798_v37, %v626_v54 }
 0x18c   :  { %v1073_v2 = vmul.f32 %v1041_v56, %v721_v1  ;;  %v915_v59 = vmul.f32 %v883_v21, %v755_v16  ;;  %v786_v13 = vmul.f32 2.7557319e-06, %v754_v53  ;;  %v978_v22 = vmul.f32 %v754_v53, %v530_v39 }
 0x18d   :  { %v944_v48 = vadd.f32 -0.16666667, %v912_v41  ;;  %v690_v9 = vmul.f32 2.0, %v658_v32 }
 0x18e   :  { %1283 = vmatprep.subr.mxu0 %v1073_v2  ;;  %v947_v33 = vadd.f32 -0.16666667, %v915_v59  ;;  %v818_v45 = vadd.f32 -0.0001984127, %v786_v13 }
 0x18f   :  { %v1008_v35 = vmul.f32 %v976_v63, %v944_v48  ;;  %v722_v46 = vsub.f32 1.0, %v690_v9 }
 0x190   :  { %v1011_v28 = vmul.f32 %v979_v27, %v947_v33  ;;  %v850_v4 = vmul.f32 %v818_v45, %v754_v53 }
 0x191   :  { %v1040_v34 = vadd.f32 %v1008_v35, %v528_v15 }
 0x192   :  { %v1043_v19 = vadd.f32 %v1011_v28, %v531_v10  ;;  %v882_v0 = vadd.f32 0.008333334, %v850_v4  ;;  %v2942_v10 = vpop.permute.xlu0 %1104 }
 0x193   :  { %v1072_v58 = vmul.f32 %v1040_v34, %v720_v12 }
 0x194   :  { %v1075_v18 = vmul.f32 %v1043_v19, %v723_v44  ;;  %v914_v26 = vmul.f32 %v882_v0, %v754_v53 }
 0x195   :  { %1284 = vmatpush1.msra.mxu0 %v1072_v58 }
 0x196   :  { %1354 = vmatprep.subr.mxu1 %v1075_v18  ;;  %v946_v60 = vadd.f32 -0.16666667, %v914_v26  ;;  %1741 = vmatmul.mubr.msk.f32.vlgmr.msra.gmra.mxu0 %vm1107_vm1, %v2704_v20 }
 0x198   :  { %v1010_v57 = vmul.f32 %v978_v22, %v946_v60 }
 0x19a   :  { %v1042_v3 = vadd.f32 %v1010_v57, %v530_v39 }
 0x19c   :  { %v1074_v29 = vmul.f32 %v1042_v3, %v722_v46 }
 0x19e   :  { %1355 = vmatpush1.msra.mxu1 %v1074_v29 }
 0x19f   :  { %1742 = vmatmul.mubr.msk.f32.vlgmr.msra.gmra.mxu1 %vm1107_vm1, %v2704_v20 }
 0x1dc   :  { %v1177_v15 = vpop.f32.mrf.mxu0 }
 0x1dd   :  { %v1178_v16 = vadd.f32 %v1177_v15, %v2942_v10 }
 0x1de   :  { %v1179_v17 = vpop.f32.mrf.mxu0 }
 0x1df   :  { %v1395_v50 = vmul.f32 0.31830987, %v1178_v16  ;;  %v1180_v37 = vadd.f32 %v1179_v17, %v2942_v10 }
 0x1e1   :  { %v2001_v8 = vcvt.f32.s32 %v1395_v50  ;;  %v1396_v23 = vmul.f32 0.31830987, %v1180_v37  ;;  %v1999_v38 = vand.u32 2147483647, %v1395_v50  ;;  %v2004_v42 = vand.u32 2147483648, %v1395_v50 }
 0x1e3   :  { %v2002_v55 = vcvt.s32.f32 %v2001_v8  ;;  %v2009_v24 = vcvt.f32.s32 %v1396_v23  ;;  %v1248_v6 = vpop.f32.mrf.mxu1  ;;  %v2007_v36 = vand.u32 2147483647, %v1396_v23  ;;  %vm2000_vm1 = vcmp.lt.f32.partialorder %v1999_v38, 8388608.0 }
 0x1e4   :  { %v1249_v25 = vadd.f32 %v1248_v6, %v2942_v10  ;;  %v2012_v52 = vand.u32 2147483648, %v1396_v23 }
 0x1e5   :  { %v2003_v51 = vand.u32 2147483647, %v2002_v55  ;;  %v2010_v20 = vcvt.s32.f32 %v2009_v24  ;;  %v1250_v31 = vpop.f32.mrf.mxu1  ;;  %vm2008_vm2 = vcmp.lt.f32.partialorder %v2007_v36, 8388608.0 }
 0x1e6   :  { %v1397_v14 = vmul.f32 0.31830987, %v1249_v25  ;;  %v2948_v40 = vadd.f32 %v1250_v31, %v2942_v10 }
 0x1e7   :  { %v2005_v30 = vor.u32 %v2004_v42, %v2003_v51  ;;  %v2011_v62 = vand.u32 2147483647, %v2010_v20 }
 0x1e8   :  { %v2017_v39 = vcvt.f32.s32 %v1397_v14  ;;  %v1398_v5 = vmul.f32 0.31830987, %v2948_v40  ;;  %v2015_v53 = vand.u32 2147483647, %v1397_v14  ;;  %v2020_v13 = vand.u32 2147483648, %v1397_v14 }
 0x1e9   :  { %v2006_v49 = vsel %vm2000_vm1, %v2005_v30, %v1395_v50  ;;  %v2013_v11 = vor.u32 %v2012_v52, %v2011_v62 }
 0x1ea   :  { %v1411_v1 = vmul.f32 3.140625, %v2006_v49  ;;  %v1443_v56 = vmul.f32 0.5, %v2006_v49  ;;  %v2018_v21 = vcvt.s32.f32 %v2017_v39  ;;  %v1427_v7 = vmul.f32 0.0009676536, %v2006_v49 }
 0x1eb   :  { %v2014_v2 = vsel %vm2008_vm2, %v2013_v11, %v1396_v23  ;;  %v2025_v63 = vcvt.f32.s32 %v1398_v5  ;;  %vm2016_vm3 = vcmp.lt.f32.partialorder %v2015_v53, 8388608.0  ;;  %v2023_v18 = vand.u32 2147483647, %v1398_v5 }
 0x1ec   :  { %v1419_v61 = vsub.f32 %v1178_v16, %v1411_v1  ;;  %v1451_v59 = vfloor.f32 %v1443_v56  ;;  %v2019_v41 = vand.u32 2147483647, %v2018_v21  ;;  %v1412_v43 = vmul.f32 3.140625, %v2014_v2 }
 0x1ed   :  { %v1444_v27 = vmul.f32 0.5, %v2014_v2  ;;  %v1428_v54 = vmul.f32 0.0009676536, %v2014_v2  ;;  %v2026_v28 = vcvt.s32.f32 %v2025_v63  ;;  %v2028_v58 = vand.u32 2147483648, %v1398_v5 }
 0x1ee   :  { %v1435_v33 = vsub.f32 %v1419_v61, %v1427_v7  ;;  %v2021_v47 = vor.u32 %v2020_v13, %v2019_v41  ;;  %v1420_v48 = vsub.f32 %v1180_v37, %v1412_v43  ;;  %v1459_v35 = vmul.f32 2.0, %v1451_v59 }
 0x1ef   :  { %v1452_v34 = vfloor.f32 %v1444_v27  ;;  %v2027_v22 = vand.u32 2147483647, %v2026_v28  ;;  %vm2024_vm4 = vcmp.lt.f32.partialorder %v2023_v18, 8388608.0 }
 0x1f0   :  { %v1491_v45 = vmul.f32 %v1435_v33, %v1435_v33  ;;  %v2022_v4 = vsel %vm2016_vm3, %v2021_v47, %v1397_v14  ;;  %v1436_v44 = vsub.f32 %v1420_v48, %v1428_v54  ;;  %v1467_v57 = vsub.f32 %v2006_v49, %v1459_v35 }
 0x1f1   :  { %v1413_v12 = vmul.f32 3.140625, %v2022_v4  ;;  %v1429_v32 = vmul.f32 0.0009676536, %v2022_v4  ;;  %v1445_v60 = vmul.f32 0.5, %v2022_v4  ;;  %v1460_v15 = vmul.f32 2.0, %v1452_v34 }
 0x1f2   :  { %v1499_v19 = vmul.f32 2.7557319e-06, %v1491_v45  ;;  %v1492_v0 = vmul.f32 %v1436_v44, %v1436_v44  ;;  %v2029_v16 = vor.u32 %v2028_v58, %v2027_v22  ;;  %v1475_v38 = vmul.f32 2.0, %v1467_v57 }
 0x1f3   :  { %v1421_v9 = vsub.f32 %v1249_v25, %v1413_v12  ;;  %v1453_v37 = vfloor.f32 %v1445_v60  ;;  %v1468_v42 = vsub.f32 %v2014_v2, %v1460_v15  ;;  %v1547_v14 = vmul.f32 %v1491_v45, %v1435_v33 }
 0x1f4   :  { %v1507_v26 = vadd.f32 -0.0001984127, %v1499_v19  ;;  %v1500_v46 = vmul.f32 2.7557319e-06, %v1492_v0  ;;  %v2030_v23 = vsel %vm2024_vm4, %v2029_v16, %v1398_v5  ;;  %v1548_v5 = vmul.f32 %v1492_v0, %v1436_v44 }
 0x1f5   :  { %v1437_v29 = vsub.f32 %v1421_v9, %v1429_v32  ;;  %v1414_v24 = vmul.f32 3.140625, %v2030_v23  ;;  %v1430_v36 = vmul.f32 0.0009676536, %v2030_v23  ;;  %v1446_v31 = vmul.f32 0.5, %v2030_v23 }
 0x1f6   :  { %v1515_v3 = vmul.f32 %v1507_v26, %v1491_v45  ;;  %v1508_v17 = vadd.f32 -0.0001984127, %v1500_v46  ;;  %v1461_v62 = vmul.f32 2.0, %v1453_v37  ;;  %v1476_v11 = vmul.f32 2.0, %v1468_v42 }
 0x1f7   :  { %v1493_v8 = vmul.f32 %v1437_v29, %v1437_v29  ;;  %v1422_v20 = vsub.f32 %v2948_v40, %v1414_v24  ;;  %v1454_v61 = vfloor.f32 %v1446_v31  ;;  %v1483_v53 = vsub.f32 1.0, %v1475_v38 }
 0x1f8   :  { %v1523_v50 = vadd.f32 0.008333334, %v1515_v3  ;;  %v1516_v55 = vmul.f32 %v1508_v17, %v1492_v0  ;;  %v1469_v59 = vsub.f32 %v2022_v4, %v1461_v62  ;;  %v1484_v63 = vsub.f32 1.0, %v1476_v11 }
 0x1f9   :  { %v1501_v51 = vmul.f32 2.7557319e-06, %v1493_v8  ;;  %v1438_v39 = vsub.f32 %v1422_v20, %v1430_v36  ;;  %v1462_v48 = vmul.f32 2.0, %v1454_v61  ;;  %v1549_v35 = vmul.f32 %v1493_v8, %v1437_v29 }
 0x1fa   :  { %v1531_v6 = vmul.f32 %v1523_v50, %v1491_v45  ;;  %v1524_v25 = vadd.f32 0.008333334, %v1516_v55  ;;  %v1477_v45 = vmul.f32 2.0, %v1469_v59  ;;  %v3070_v59 = vld [vmem:[#allocation8_spill] sm:$0xff] }
 0x1fb   :  { %v1509_v52 = vadd.f32 -0.0001984127, %v1501_v51  ;;  %v1494_v7 = vmul.f32 %v1438_v39, %v1438_v39 }
 0x1fc   :  { %v1539_v30 = vadd.f32 -0.16666667, %v1531_v6  ;;  %v1532_v49 = vmul.f32 %v1524_v25, %v1492_v0  ;;  %v1485_v0 = vsub.f32 1.0, %v1477_v45 }
 0x1fd   :  { %v1517_v56 = vmul.f32 %v1509_v52, %v1493_v8  ;;  %v1502_v13 = vmul.f32 2.7557319e-06, %v1494_v7  ;;  %v1550_v57 = vmul.f32 %v1494_v7, %v1438_v39 }
 0x1fe   :  { %v1555_v1 = vmul.f32 %v1547_v14, %v1539_v30  ;;  %v1540_v21 = vadd.f32 -0.16666667, %v1532_v49 }
 0x1ff   :  { %v1525_v41 = vadd.f32 0.008333334, %v1517_v56  ;;  %v1510_v54 = vadd.f32 -0.0001984127, %v1502_v13 }
 0x200   :  { %v1563_v2 = vadd.f32 %v1555_v1, %v1435_v33  ;;  %v1556_v40 = vmul.f32 %v1548_v5, %v1540_v21  ;;  %v1470_v33 = vsub.f32 %v2030_v23, %v1462_v48 }
 0x201   :  { %v1533_v27 = vmul.f32 %v1525_v41, %v1493_v8  ;;  %v1518_v12 = vmul.f32 %v1510_v54, %v1494_v7 }
 0x202   :  { %v1571_v43 = vmul.f32 %v1563_v2, %v1483_v53  ;;  %v1564_v47 = vadd.f32 %v1556_v40, %v1436_v44  ;;  %v1478_v44 = vmul.f32 2.0, %v1470_v33 }
 0x203   :  { %v1541_v28 = vadd.f32 -0.16666667, %v1533_v27  ;;  %v1526_v4 = vadd.f32 0.008333334, %v1518_v12 }
 0x204   :  { %1579 = vst [vmem:[#allocation2] sm:$0xff] %v1571_v43  ;;  %v1572_v19 = vmul.f32 %v1564_v47, %v1484_v63  ;;  %v1587_v34 = vand.u32 2147483647, %v1571_v43  ;;  %v1486_v50 = vsub.f32 1.0, %v1478_v44 }
 0x205   :  { %v1557_v32 = vmul.f32 %v1549_v35, %v1541_v28  ;;  %v1534_v26 = vmul.f32 %v1526_v4, %v1494_v7 }
 0x206   :  { %1580 = vst [vmem:[#allocation2 + $0x8] sm:$0xff] %v1572_v19  ;;  %v1588_v58 = vand.u32 2147483647, %v1572_v19  ;;  %v1595_v9 = vrot.slane %v1587_v34, 4 }
 0x207   :  { %v1565_v18 = vadd.f32 %v1557_v32, %v1437_v29  ;;  %v1542_v22 = vadd.f32 -0.16666667, %v1534_v26 }
 0x208   :  { %v1601_v3 = vrot.slane %v1588_v58, 4  ;;  %v1596_v16 = vadd.f32 %v1595_v9, %v1587_v34 }
 0x209   :  { %v1573_v60 = vmul.f32 %v1565_v18, %v1485_v0  ;;  %v1558_v15 = vmul.f32 %v1550_v57, %v1542_v22 }
 0x20a   :  { %v1602_v23 = vadd.f32 %v1601_v3, %v1588_v58  ;;  %v1597_v24 = vrot.slane %v1596_v16, 2 }
 0x20b   :  { %1581 = vst [vmem:[#allocation2 + $0x10] sm:$0xff] %v1573_v60  ;;  %v1589_v46 = vand.u32 2147483647, %v1573_v60  ;;  %v1566_v37 = vadd.f32 %v1558_v15, %v1438_v39  ;;  %v2123_v39 = vmov 1966171168  }
 0x20c   :  { %v1598_v6 = vadd.f32 %v1597_v24, %v1596_v16  ;;  %v1603_v51 = vrot.slane %v1602_v23, 2  ;;  %v1665_v1 = vunpack.c.l.s4 %v2123_v39 }
 0x20d   :  { %v1607_v17 = vrot.slane %v1589_v46, 4  ;;  %v1574_v55 = vmul.f32 %v1566_v37, %v1486_v50 }
 0x20e   :  { %v1599_v20 = vrot.slane %v1598_v6, 1  ;;  %v1604_v36 = vadd.f32 %v1603_v51, %v1602_v23  ;;  %v1666_v5 = vunpack.c.0.s8 %v1665_v1 }
 0x20f   :  { %v1608_v8 = vadd.f32 %v1607_v17, %v1589_v46  ;;  %1582 = vst [vmem:[#allocation2 + $0x18] sm:$0xff] %v1574_v55  ;;  %v1590_v38 = vand.u32 2147483647, %v1574_v55 }
 0x210   :  { %v1600_v30 = vadd.f32 %v1599_v20, %v1598_v6  ;;  %v1605_v14 = vrot.slane %v1604_v36, 1  ;;  %v2953_v41 = vsub.s32 %v1666_v5, %v3070_v59 }
 0x211   :  { %v1609_v29 = vrot.slane %v1608_v8, 2  ;;  %v1613_v42 = vrot.slane %v1590_v38, 4 }
 0x212   :  { %v1606_v49 = vadd.f32 %v1605_v14, %v1604_v36  ;;  %v1644_v11 = vmul.f32 0.125, %v1600_v30 }
 0x213   :  { %v1610_v25 = vadd.f32 %v1609_v29, %v1608_v8  ;;  %v1614_v31 = vadd.f32 %v1613_v42, %v1590_v38 }
 0x214   :  { %v1645_v21 = vmul.f32 0.125, %v1606_v49 }
 0x215   :  { %v1611_v62 = vrot.slane %v1610_v25, 1  ;;  %v1615_v52 = vrot.slane %v1614_v31, 2 }
 0x216   :  { %v1660_v53 = vcombine.low %v1644_v11, %v1645_v21 }
 0x217   :  { %v1616_v56 = vadd.f32 %v1615_v52, %v1614_v31  ;;  %v1612_v61 = vadd.f32 %v1611_v62, %v1610_v25 }
 0x218   :  { %v2956_v27 = vrot.slane %v1660_v53, %v2953_v41 }
 0x219   :  { %v1617_v7 = vrot.slane %v1616_v56, 1  ;;  %v1646_v40 = vmul.f32 0.125, %v1612_v61 }
 0x21b   :  { %v1618_v2 = vadd.f32 %v1617_v7, %v1616_v56 }
 0x21d   :  { %v1647_v13 = vmul.f32 0.125, %v1618_v2 }
 0x21f   :  { %v1661_v43 = vcombine.low %v1646_v40, %v1647_v13 }
 0x221   :  { %v2959_v63 = vrot.slane %v1661_v43, %v2953_v41 }
 0x223   :  { %v1692_v47 = vcombine.low %v2956_v27, %v2959_v63 }
 0x256   :  { %v1319_v48 = vpop.f32.mrf.mxu0 }
 0x257   :  { %v1320_v54 = vadd.f32 %v1319_v48, %v2942_v10 }
 0x258   :  { %v1321_v45 = vpop.f32.mrf.mxu0 }
 0x259   :  { %v1399_v28 = vmul.f32 0.31830987, %v1320_v54  ;;  %v1322_v35 = vadd.f32 %v1321_v45, %v2942_v10 }
 0x25b   :  { %v2033_v19 = vcvt.f32.s32 %v1399_v28  ;;  %v1400_v12 = vmul.f32 0.31830987, %v1322_v35  ;;  %v2031_v33 = vand.u32 2147483647, %v1399_v28  ;;  %v2036_v18 = vand.u32 2147483648, %v1399_v28 }
 0x25d   :  { %v2034_v34 = vcvt.s32.f32 %v2033_v19  ;;  %v2041_v32 = vcvt.f32.s32 %v1400_v12  ;;  %v2039_v9 = vand.u32 2147483647, %v1400_v12  ;;  %vm2032_vm5 = vcmp.lt.f32.partialorder %v2031_v33, 8388608.0 }
 0x25e   :  { %v2044_v3 = vand.u32 2147483648, %v1400_v12 }
 0x25f   :  { %v1390_v4 = vpop.f32.mrf.mxu1  ;;  %v2035_v0 = vand.u32 2147483647, %v2034_v34  ;;  %v2042_v26 = vcvt.s32.f32 %v2041_v32  ;;  %vm2040_vm6 = vcmp.lt.f32.partialorder %v2039_v9, 8388608.0 }
 0x260   :  { %v1391_v58 = vadd.f32 %v1390_v4, %v2942_v10 }
 0x261   :  { %v1392_v60 = vpop.f32.mrf.mxu1  ;;  %v2037_v44 = vor.u32 %v2036_v18, %v2035_v0  ;;  %v2043_v57 = vand.u32 2147483647, %v2042_v26 }
 0x262   :  { %v1401_v22 = vmul.f32 0.31830987, %v1391_v58  ;;  %v2967_v46 = vadd.f32 %v1392_v60, %v2942_v10 }
 0x263   :  { %v2038_v15 = vsel %vm2032_vm5, %v2037_v44, %v1399_v28  ;;  %v2045_v37 = vor.u32 %v2044_v3, %v2043_v57 }
 0x264   :  { %v2049_v16 = vcvt.f32.s32 %v1401_v22  ;;  %v1415_v17 = vmul.f32 3.140625, %v2038_v15  ;;  %v1447_v50 = vmul.f32 0.5, %v2038_v15  ;;  %v1402_v23 = vmul.f32 0.31830987, %v2967_v46 }
 0x265   :  { %v1431_v24 = vmul.f32 0.0009676536, %v2038_v15  ;;  %v2047_v29 = vand.u32 2147483647, %v1401_v22  ;;  %v2046_v38 = vsel %vm2040_vm6, %v2045_v37, %v1400_v12  ;;  %v2052_v42 = vand.u32 2147483648, %v1401_v22 }
 0x266   :  { %v2050_v8 = vcvt.s32.f32 %v2049_v16  ;;  %v1423_v55 = vsub.f32 %v1320_v54, %v1415_v17  ;;  %v1455_v6 = vfloor.f32 %v1447_v50  ;;  %v1416_v10 = vmul.f32 3.140625, %v2046_v38 }
 0x267   :  { %v1448_v20 = vmul.f32 0.5, %v2046_v38  ;;  %v2057_v36 = vcvt.f32.s32 %v1402_v23  ;;  %v1432_v14 = vmul.f32 0.0009676536, %v2046_v38  ;;  %vm2048_vm7 = vcmp.lt.f32.partialorder %v2047_v29, 8388608.0 }
 0x268   :  { %v2051_v51 = vand.u32 2147483647, %v2050_v8  ;;  %v1439_v25 = vsub.f32 %v1423_v55, %v1431_v24  ;;  %v1424_v30 = vsub.f32 %v1322_v35, %v1416_v10  ;;  %v1463_v49 = vmul.f32 2.0, %v1455_v6 }
 0x269   :  { %v2058_v52 = vcvt.s32.f32 %v2057_v36  ;;  %v1456_v21 = vfloor.f32 %v1448_v20  ;;  %v2055_v7 = vand.u32 2147483647, %v1402_v23  ;;  %v2060_v53 = vand.u32 2147483648, %v1402_v23 }
 0x26a   :  { %v2053_v31 = vor.u32 %v2052_v42, %v2051_v51  ;;  %v1495_v62 = vmul.f32 %v1439_v25, %v1439_v25  ;;  %v1440_v1 = vsub.f32 %v1424_v30, %v1432_v14  ;;  %v1471_v43 = vsub.f32 %v2038_v15, %v1463_v49 }
 0x26b   :  { %v2059_v13 = vand.u32 2147483647, %v2058_v52  ;;  %v1464_v28 = vmul.f32 2.0, %v1456_v21  ;;  %vm2056_vm8 = vcmp.lt.f32.partialorder %v2055_v7, 8388608.0 }
 0x26c   :  { %v2054_v39 = vsel %vm2048_vm7, %v2053_v31, %v1401_v22  ;;  %v1503_v56 = vmul.f32 2.7557319e-06, %v1495_v62  ;;  %v1496_v61 = vmul.f32 %v1440_v1, %v1440_v1  ;;  %v1479_v18 = vmul.f32 2.0, %v1471_v43 }
 0x26d   :  { %v1417_v11 = vmul.f32 3.140625, %v2054_v39  ;;  %v1433_v5 = vmul.f32 0.0009676536, %v2054_v39  ;;  %v1449_v40 = vmul.f32 0.5, %v2054_v39  ;;  %v2061_v35 = vor.u32 %v2060_v53, %v2059_v13 }
 0x26e   :  { %v1511_v2 = vadd.f32 -0.0001984127, %v1503_v56  ;;  %v1504_v48 = vmul.f32 2.7557319e-06, %v1496_v61  ;;  %v1551_v15 = vmul.f32 %v1495_v62, %v1439_v25  ;;  %v1552_v29 = vmul.f32 %v1496_v61, %v1440_v1 }
 0x26f   :  { %v1425_v59 = vsub.f32 %v1391_v58, %v1417_v11  ;;  %v1457_v34 = vfloor.f32 %v1449_v40  ;;  %v2062_v33 = vsel %vm2056_vm8, %v2061_v35, %v1402_v23  ;;  %v1472_v58 = vsub.f32 %v2046_v38, %v1464_v28 }
 0x270   :  { %v1519_v54 = vmul.f32 %v1511_v2, %v1495_v62  ;;  %v1512_v19 = vadd.f32 -0.0001984127, %v1504_v48  ;;  %v1418_v0 = vmul.f32 3.140625, %v2062_v33  ;;  %v1434_v22 = vmul.f32 0.0009676536, %v2062_v33 }
 0x271   :  { %v1441_v45 = vsub.f32 %v1425_v59, %v1433_v5  ;;  %v1450_v57 = vmul.f32 0.5, %v2062_v33  ;;  %v1465_v16 = vmul.f32 2.0, %v1457_v34  ;;  %v1480_v23 = vmul.f32 2.0, %v1472_v58 }
 0x272   :  { %v1527_v12 = vadd.f32 0.008333334, %v1519_v54  ;;  %v1520_v4 = vmul.f32 %v1512_v19, %v1496_v61  ;;  %v1426_v44 = vsub.f32 %v2967_v46, %v1418_v0  ;;  %v1487_v42 = vsub.f32 1.0, %v1479_v18 }
 0x273   :  { %v1497_v32 = vmul.f32 %v1441_v45, %v1441_v45  ;;  %v1458_v6 = vfloor.f32 %v1450_v57  ;;  %v1473_v10 = vsub.f32 %v2054_v39, %v1465_v16  ;;  %v1488_v14 = vsub.f32 1.0, %v1480_v23 }
 0x274   :  { %v1535_v26 = vmul.f32 %v1527_v12, %v1495_v62  ;;  %v1528_v60 = vadd.f32 0.008333334, %v1520_v4  ;;  %v1442_v37 = vsub.f32 %v1426_v44, %v1434_v22 }
 0x275   :  { %v1505_v9 = vmul.f32 2.7557319e-06, %v1497_v32  ;;  %v1466_v52 = vmul.f32 2.0, %v1458_v6  ;;  %v1481_v11 = vmul.f32 2.0, %v1473_v10  ;;  %v1553_v5 = vmul.f32 %v1497_v32, %v1441_v45 }
 0x276   :  { %v1543_v3 = vadd.f32 -0.16666667, %v1535_v26  ;;  %v1536_v50 = vmul.f32 %v1528_v60, %v1496_v61  ;;  %v1498_v51 = vmul.f32 %v1442_v37, %v1442_v37 }
 0x277   :  { %v1513_v17 = vadd.f32 -0.0001984127, %v1505_v9  ;;  %v1474_v39 = vsub.f32 %v2062_v33, %v1466_v52  ;;  %v1489_v40 = vsub.f32 1.0, %v1481_v11 }
 0x278   :  { %v1559_v8 = vmul.f32 %v1551_v15, %v1543_v3  ;;  %v1544_v24 = vadd.f32 -0.16666667, %v1536_v50  ;;  %v1506_v36 = vmul.f32 2.7557319e-06, %v1498_v51  ;;  %v1554_v12 = vmul.f32 %v1498_v51, %v1442_v37 }
 0x279   :  { %v1521_v55 = vmul.f32 %v1513_v17, %v1497_v32  ;;  %v1482_v35 = vmul.f32 2.0, %v1474_v39 }
 0x27a   :  { %v1567_v38 = vadd.f32 %v1559_v8, %v1439_v25  ;;  %v1560_v46 = vmul.f32 %v1552_v29, %v1544_v24  ;;  %v1514_v49 = vadd.f32 -0.0001984127, %v1506_v36 }
 0x27b   :  { %v1529_v20 = vadd.f32 0.008333334, %v1521_v55  ;;  %v1490_v33 = vsub.f32 1.0, %v1482_v35 }
 0x27c   :  { %v1575_v31 = vmul.f32 %v1567_v38, %v1487_v42  ;;  %v1568_v62 = vadd.f32 %v1560_v46, %v1440_v1  ;;  %v1522_v7 = vmul.f32 %v1514_v49, %v1498_v51 }
 0x27d   :  { %v1537_v30 = vmul.f32 %v1529_v20, %v1497_v32 }
 0x27e   :  { %1583 = vst [vmem:[#allocation2 + $0x20] sm:$0xff] %v1575_v31  ;;  %v1591_v56 = vand.u32 2147483647, %v1575_v31  ;;  %v1576_v61 = vmul.f32 %v1568_v62, %v1488_v14  ;;  %v1530_v59 = vadd.f32 0.008333334, %v1522_v7 }
 0x27f   :  { %v1545_v21 = vadd.f32 -0.16666667, %v1537_v30 }
 0x280   :  { %v1619_v53 = vrot.slane %v1591_v56, 4  ;;  %1584 = vst [vmem:[#allocation2 + $0x28] sm:$0xff] %v1576_v61  ;;  %v1592_v25 = vand.u32 2147483647, %v1576_v61  ;;  %v1538_v1 = vmul.f32 %v1530_v59, %v1498_v51 }
 0x281   :  { %v1561_v2 = vmul.f32 %v1553_v5, %v1545_v21 }
 0x282   :  { %v1620_v43 = vadd.f32 %v1619_v53, %v1591_v56  ;;  %v1625_v48 = vrot.slane %v1592_v25, 4  ;;  %v1546_v19 = vadd.f32 -0.16666667, %v1538_v1 }
 0x283   :  { %v1569_v13 = vadd.f32 %v1561_v2, %v1441_v45 }
 0x284   :  { %v1626_v28 = vadd.f32 %v1625_v48, %v1592_v25  ;;  %v1562_v32 = vmul.f32 %v1554_v12, %v1546_v19  ;;  %v1621_v4 = vrot.slane %v1620_v43, 2 }
 0x285   :  { %v1577_v54 = vmul.f32 %v1569_v13, %v1489_v40 }
 0x286   :  { %v1627_v0 = vrot.slane %v1626_v28, 2  ;;  %v1570_v26 = vadd.f32 %v1562_v32, %v1442_v37  ;;  %v1622_v60 = vadd.f32 %v1621_v4, %v1620_v43 }
 0x287   :  { %1585 = vst [vmem:[#allocation2 + $0x30] sm:$0xff] %v1577_v54  ;;  %v1593_v34 = vand.u32 2147483647, %v1577_v54 }
 0x288   :  { %v1628_v9 = vadd.f32 %v1627_v0, %v1626_v28  ;;  %v1578_v58 = vmul.f32 %v1570_v26, %v1490_v33 }
 0x289   :  { %v1631_v18 = vrot.slane %v1593_v34, 4 }
 0x28a   :  { %1586 = vst [vmem:[#allocation2 + $0x38] sm:$0xff] %v1578_v58  ;;  %v1594_v22 = vand.u32 2147483647, %v1578_v58  ;;  %v1629_v57 = vrot.slane %v1628_v9, 1 }
 0x28b   :  { %v1632_v45 = vadd.f32 %v1631_v18, %v1593_v34 }
 0x28d   :  { %v1633_v44 = vrot.slane %v1632_v45, 2 }
 0x28e   :  { %2087 = shalt.err (!%p2084_p4)
}
 0x28f   :  { %1720 = dma.vmem_to_hbm [thread:$0]  %s1718_s17, 1024, %s2989_s5, [#allocation3]   ;;  %v1637_v3 = vrot.slane %v1594_v22, 4  ;;  %v1623_v15 = vrot.slane %v1622_v60, 1  ;;  %v1634_v16 = vadd.f32 %v1633_v44, %v1632_v45  ;;  %v1630_v50 = vadd.f32 %v1629_v57, %v1628_v9 }
 0x290   :  { %s2125_s5 = smov [#allocation4]   ;;  %v1700_v14 = vrot.slane %v1692_v47, %v2953_v41 }
 0x291   :  { %v1638_v17 = vadd.f32 %v1637_v3, %v1594_v22  ;;  %v1624_v37 = vadd.f32 %v1623_v15, %v1622_v60  ;;  %v1635_v8 = vrot.slane %v1634_v16, 1  ;;  %v1649_v24 = vmul.f32 0.125, %v1630_v50  ;;  %s1727_s21 = sshll.u32 %s2125_s5, 4  ;;  %s1728_s21 = int_to_ptr.vmem [resolvable:$true] %s1727_s21 }
 0x292   :  { %s2096_s22 = scalar_lea.vmem %s1728_s21, 128  ;;  %p2101_p6 = scmp.lt.s32.totalorder %s1728_s21, %s1728_s21 }
 0x293   :  { %v1639_v55 = vrot.slane %v1638_v17, 2  ;;  %v1636_v29 = vadd.f32 %v1635_v8, %v1634_v16  ;;  %v1648_v51 = vmul.f32 0.125, %v1624_v37  ;;  %p2097_p5 = scmp.ne.s32.totalorder %s1728_s21, %s2096_s22  ;;  %p2102_p7 = scmp.lt.s32.totalorder %s2096_s22, %s2096_s22 }
 0x295   :  { %v1640_v23 = vadd.f32 %v1639_v55, %v1638_v17  ;;  %v1662_v38 = vcombine.low %v1648_v51, %v1649_v24  ;;  %v1650_v10 = vmul.f32 0.125, %v1636_v29  ;;  %p2103_p8 = por %p2102_p7, %p2101_p6 }
 0x297   :  { %v1641_v6 = vrot.slane %v1640_v23, 1  ;;  %v1684_v36 = vrot.slane %v1662_v38, %v2953_v41  ;;  %p2104_p9 = pnand %p2103_p8, %p2097_p5 }
 0x299   :  { %v1642_v42 = vadd.f32 %v1641_v6, %v1640_v23 }
 0x29b   :  { %v1651_v20 = vmul.f32 0.125, %v1642_v42 }
 0x29d   :  { %v1663_v46 = vcombine.low %v1650_v10, %v1651_v20 }
 0x29f   :  { %v1691_v31 = vrot.slane %v1663_v46, %v2953_v41 }
 0x2a1   :  { %v1693_v30 = vcombine.low %v1684_v36, %v1691_v31 }
 0x2a3   :  { %v1707_v62 = vrot.slane %v1693_v30, %v2953_v41 }
 0x2a5   :  { %v1708_v52 = vcombine.low %v1700_v14, %v1707_v62 }
 0x2a7   :  { %1710 = vst [vmem:[#allocation4] sm:$0xff] %v1708_v52 }
 0x2a8   :  { %2107 = shalt.err (!%p2104_p9)
}
 0x2a9   :  { %1730 = dma.vmem_to_hbm [thread:$0]  %s1728_s21, 128, %s2990_s6, [#allocation5]  }
 0x2aa   :  { %2116 = dma.done.wait [#allocation3], 1024  }
 0x2ab   :  { %2117 = vsyncadd [#allocation3], 4294966272 }
 0x2ac   :  { %2118 = dma.done.wait [#allocation5], 128  }
 0x2ad   :  { %2119 = vsyncadd [#allocation5], 4294967168 }
 0x2ae   :  { %1737 = vsyncpa [#allocation3], 1 }
 0x2af   :  { %1738 = vsyncpa [#allocation5], 1 }

</bundles_post_ra>
